<compile_context>
chip_gen: v7x
topology: tpu7x:2x2x1
jax: 0.10.0
libtpu: 0.0.40
codegen_flags: <defaults>
</compile_context>

<pallas_src>
import functools
import math

import jax
import jax.numpy as jnp
from jax import lax
from jax.experimental import pallas as pl
from jax.experimental.pallas import tpu as pltpu

MXU_DTYPE = jnp.bfloat16  # MXU operand dtype; accumulation stays in f32.


def _pick_tile(dim, pref, align):
    """Largest legal tile <= pref that is a multiple of `align` and divides `dim`.
    Falls back to the full dim (always legal for BlockSpec)."""
    if dim <= pref:
        return dim
    t = (pref // align) * align
    while t >= align:
        if dim % t == 0:
            return t
        t -= align
    return dim


# ---------------------------------------------------------------------------
# Kernel 1: LayerNorm (row tiles)
# ---------------------------------------------------------------------------
def layernorm_kernel(x_ref, g_ref, b_ref, o_ref):
    x = x_ref[...].astype(jnp.float32)
    mean = jnp.mean(x, axis=-1, keepdims=True)
    xc = x - mean
    var = jnp.mean(xc * xc, axis=-1, keepdims=True)
    inv = lax.rsqrt(var + 1e-5)
    o_ref[...] = (xc * inv * g_ref[...] + b_ref[...]).astype(o_ref.dtype)


def pallas_layernorm(x2d, gamma, beta, *, tm=256):
    M, C = x2d.shape
    tm = _pick_tile(M, tm, 8)
    return pl.pallas_call(
        layernorm_kernel,
        out_shape=jax.ShapeDtypeStruct((M, C), jnp.float32),
        grid=(M // tm,),
        in_specs=[
            pl.BlockSpec((tm, C), lambda i: (i, 0)),
            pl.BlockSpec((1, C), lambda i: (0, 0)),
            pl.BlockSpec((1, C), lambda i: (0, 0)),
        ],
        out_specs=pl.BlockSpec((tm, C), lambda i: (i, 0)),
        compiler_params=pltpu.CompilerParams(dimension_semantics=("parallel",)),
    )(x2d, gamma.reshape(1, C), beta.reshape(1, C))


# ---------------------------------------------------------------------------
# Kernel 2: tiled linear  y = x @ W + b  (optional fused SiLU)
# ---------------------------------------------------------------------------
def linear_kernel(x_ref, w_ref, b_ref, o_ref, acc_ref, *, activation):
    @pl.when(pl.program_id(2) == 0)
    def _():
        acc_ref[...] = jnp.zeros_like(acc_ref)

    acc_ref[...] += jnp.dot(
        x_ref[...].astype(MXU_DTYPE),
        w_ref[...].astype(MXU_DTYPE),
        preferred_element_type=jnp.float32,
    )

    @pl.when(pl.program_id(2) == pl.num_programs(2) - 1)
    def _():
        out = acc_ref[...] + b_ref[...].astype(jnp.float32)
        if activation == "silu":
            out = out * (1.0 / (1.0 + jnp.exp(-out)))  # SiLU, exp goes to the EUP
        o_ref[...] = out.astype(o_ref.dtype)


def pallas_linear(x2d, w, b, activation=None, *, tm=256, tn=256, tk=512):
    """x2d: (M, K) f32, w: (K, N) (bf16 or f32), b: (N,) f32 -> (M, N) f32."""
    M, K = x2d.shape
    K2, N = w.shape
    assert K2 == K
    tm = _pick_tile(M, tm, 8)
    tn = _pick_tile(N, tn, 128)
    tk = _pick_tile(K, tk, 128)
    grid = (M // tm, N // tn, K // tk)
    kernel = functools.partial(linear_kernel, activation=activation)
    return pl.pallas_call(
        kernel,
        out_shape=jax.ShapeDtypeStruct((M, N), jnp.float32),
        grid=grid,
        in_specs=[
            pl.BlockSpec((tm, tk), lambda i, j, k: (i, k)),
            pl.BlockSpec((tk, tn), lambda i, j, k: (k, j)),
            pl.BlockSpec((1, tn), lambda i, j, k: (0, j)),
        ],
        out_specs=pl.BlockSpec((tm, tn), lambda i, j, k: (i, j)),
        scratch_shapes=[pltpu.VMEM((tm, tn), jnp.float32)],
        compiler_params=pltpu.CompilerParams(
            dimension_semantics=("parallel", "parallel", "arbitrary"),
            vmem_limit_bytes=32 * 1024 * 1024,
        ),
    )(x2d, w, b.reshape(1, N))


# ---------------------------------------------------------------------------
# Kernel 3: causal attention, one batch per grid step, all heads per step
# ---------------------------------------------------------------------------
def attn_kernel(q_ref, k_ref, v_ref, o_ref, *, n_head):
    _, T, C = q_ref.shape
    D = C // n_head
    scale = 1.0 / math.sqrt(D)

    # Causal additive bias, built once per grid step and reused by every head.
    row = lax.broadcasted_iota(jnp.int32, (T, T), 0)
    col = lax.broadcasted_iota(jnp.int32, (T, T), 1)
    mask_bias = jnp.where(row >= col, 0.0, -jnp.inf).astype(jnp.float32)

    # Static unroll over heads: the per-head matmuls pipeline back-to-back on the MXU.
    for h in range(n_head):
        sl = slice(h * D, (h + 1) * D)
        q = (q_ref[0, :, sl] * scale).astype(MXU_DTYPE)  # (T, D)
        k = k_ref[0, :, sl].astype(MXU_DTYPE)            # (T, D)
        v = v_ref[0, :, sl].astype(MXU_DTYPE)            # (T, D)

        # scores = (q/sqrt(D)) @ k^T, contracting the D axis; f32 accumulation.
        s = lax.dot_general(q, k, (((1,), (1,)), ((), ())),
                            preferred_element_type=jnp.float32)
        s = s + mask_bias

        m = jnp.max(s, axis=-1, keepdims=True)
        p = jnp.exp(s - m)
        denom = jnp.sum(p, axis=-1, keepdims=True)
        p = p * pl.reciprocal(denom, approx=True)

        out = jnp.dot(p.astype(MXU_DTYPE), v, preferred_element_type=jnp.float32)
        o_ref[0, :, sl] = out.astype(o_ref.dtype)

    # TODO(synk): for long sequences (T >= 1024) switch to a flash-style KV-tiled
    # online softmax with causal block skipping to bound the (T, T) working set.


def pallas_causal_attention(qkv, n_head):
    """qkv: (B, T, 3C) from c_attn -> (B, T, C) attention output (pre-c_proj)."""
    B, T, C3 = qkv.shape
    C = C3 // 3
    kernel = functools.partial(attn_kernel, n_head=n_head)
    # q / k / v are the three C-wide column blocks of qkv; select them via the
    # BlockSpec index_map (block index 0/1/2 along the last axis) instead of
    # splitting / transposing in HBM.
    q_spec = pl.BlockSpec((1, T, C), lambda b: (b, 0, 0))
    k_spec = pl.BlockSpec((1, T, C), lambda b: (b, 0, 1))
    v_spec = pl.BlockSpec((1, T, C), lambda b: (b, 0, 2))
    return pl.pallas_call(
        kernel,
        out_shape=jax.ShapeDtypeStruct((B, T, C), jnp.float32),
        grid=(B,),
        in_specs=[q_spec, k_spec, v_spec],
        out_specs=pl.BlockSpec((1, T, C), lambda b: (b, 0, 0)),
        compiler_params=pltpu.CompilerParams(
            dimension_semantics=("parallel",),
            vmem_limit_bytes=32 * 1024 * 1024,
        ),
    )(qkv, qkv, qkv)


# ---------------------------------------------------------------------------
# Full Block forward
# ---------------------------------------------------------------------------
def block_forward(x, params, n_head):
    """x: (B, T, C). Mirrors Block.forward (ln_1 -> attn -> +res, ln_2 -> mlp -> +res)."""
    B, T, C = x.shape
    x2 = x.reshape(B * T, C)

    # --- attention branch ---
    h = pallas_layernorm(x2, params["ln1_g"], params["ln1_b"])
    qkv = pallas_linear(h, params["w_attn"], params["b_attn"])        # (B*T, 3C)
    y = pallas_causal_attention(qkv.reshape(B, T, 3 * C), n_head)     # (B, T, C)
    y = pallas_linear(y.reshape(B * T, C), params["w_proj"], params["b_proj"])
    x2 = x2 + y

    # --- MLP branch ---
    h = pallas_layernorm(x2, params["ln2_g"], params["ln2_b"])
    h = pallas_linear(h, params["w_fc"], params["b_fc"], activation="silu")
    h = pallas_linear(h, params["w_mproj"], params["b_mproj"])
    x2 = x2 + h

    return x2.reshape(B, T, C)


# ---------------------------------------------------------------------------
# Pure-JAX f32 reference (for correctness check)
# ---------------------------------------------------------------------------
def reference_block(x, params, n_head):
    def ln(z, g, b):
        m = z.mean(-1, keepdims=True)
        v = jnp.mean((z - m) ** 2, -1, keepdims=True)
        return (z - m) * lax.rsqrt(v + 1e-5) * g + b

    B, T, C = x.shape
    D = C // n_head
    wa = params["w_attn"].astype(jnp.float32)
    wp = params["w_proj"].astype(jnp.float32)
    wf = params["w_fc"].astype(jnp.float32)
    wm = params["w_mproj"].astype(jnp.float32)

    h = ln(x, params["ln1_g"], params["ln1_b"])
    qkv = h @ wa + params["b_attn"]
    q, k, v = jnp.split(qkv, 3, axis=-1)
    q = q.reshape(B, T, n_head, D).transpose(0, 2, 1, 3)
    k = k.reshape(B, T, n_head, D).transpose(0, 2, 1, 3)
    v = v.reshape(B, T, n_head, D).transpose(0, 2, 1, 3)
    s = jnp.einsum("bhqd,bhkd->bhqk", q, k) / math.sqrt(D)
    mask = jnp.tril(jnp.ones((T, T), dtype=bool))
    s = jnp.where(mask, s, -jnp.inf)
    p = jax.nn.softmax(s, axis=-1)
    y = jnp.einsum("bhqk,bhkd->bhqd", p, v)
    y = y.transpose(0, 2, 1, 3).reshape(B, T, C)
    x = x + (y @ wp + params["b_proj"])

    h = ln(x, params["ln2_g"], params["ln2_b"])
    h = h @ wf + params["b_fc"]
    h = h * jax.nn.sigmoid(h)
    x = x + (h @ wm + params["b_mproj"])
    return x


# ---------------------------------------------------------------------------
if __name__ == "__main__":
    # Small config consistent with the module: n_embed % n_heads == 0, T <= block_size.
    B, T = 2, 16
    n_embed, n_heads = 128, 4

    key = jax.random.PRNGKey(0)
    keys = jax.random.split(key, 13)

    bound = 1.0 / math.sqrt(n_embed)
    bound4 = 1.0 / math.sqrt(4 * n_embed)

    def u(k, shape, b):
        return jax.random.uniform(k, shape, jnp.float32, -b, b)

    # Weights stored in bf16 (halves HBM traffic, matches MXU operand dtype);
    # biases and LayerNorm params stay f32.
    params = {
        "ln1_g": 1.0 + 0.1 * u(keys[0], (n_embed,), 1.0),
        "ln1_b": 0.1 * u(keys[1], (n_embed,), 1.0),
        "w_attn": u(keys[2], (n_embed, 3 * n_embed), bound).astype(MXU_DTYPE),
        "b_attn": u(keys[3], (3 * n_embed,), bound),
        "w_proj": u(keys[4], (n_embed, n_embed), bound).astype(MXU_DTYPE),
        "b_proj": u(keys[5], (n_embed,), bound),
        "ln2_g": 1.0 + 0.1 * u(keys[6], (n_embed,), 1.0),
        "ln2_b": 0.1 * u(keys[7], (n_embed,), 1.0),
        "w_fc": u(keys[8], (n_embed, 4 * n_embed), bound).astype(MXU_DTYPE),
        "b_fc": u(keys[9], (4 * n_embed,), bound),
        "w_mproj": u(keys[10], (4 * n_embed, n_embed), bound4).astype(MXU_DTYPE),
        "b_mproj": u(keys[11], (n_embed,), bound4),
    }

    x = jax.random.normal(keys[12], (B, T, n_embed), jnp.float32)

    fwd = jax.jit(block_forward, static_argnums=2)
    y = jax.block_until_ready(fwd(x, params, n_heads))

    y_ref = reference_block(x, params, n_heads)
    assert y.shape == (B, T, n_embed)
    max_err = jnp.max(jnp.abs(y - y_ref))
    assert jnp.allclose(y, y_ref, atol=5e-2, rtol=5e-2), f"mismatch, max abs err {max_err}"

    print("KERNEL_OK")
</pallas_src>

<mosaic_0001>
module attributes {stable_mosaic.version = 11 : i64} {
  func.func @attn_kernel(%arg0: i32, %arg1: memref<1x16x128xf32, #tpu.memory_space<vmem>>, %arg2: memref<1x16x128xf32, #tpu.memory_space<vmem>>, %arg3: memref<1x16x128xf32, #tpu.memory_space<vmem>>, %arg4: memref<1x16x128xf32, #tpu.memory_space<vmem>>) attributes {dimension_semantics = [#tpu.dimension_semantics<parallel>], iteration_bounds = array<i64: 2>, scalar_prefetch = 0 : i64, scratch_operands = 0 : i64, tpu.core_type = #tpu.core_type<tc>, window_params = [{transform_indices = @transform_0, window_bounds = array<i64: 1, 16, 128>}, {transform_indices = @transform_1, window_bounds = array<i64: 1, 16, 128>}, {transform_indices = @transform_2, window_bounds = array<i64: 1, 16, 128>}, {transform_indices = @transform_3, window_bounds = array<i64: 1, 16, 128>}]} {
    %0 = tpu.iota {dimensions = array<i32: 0>} : vector<16x16xi32>
    %1 = tpu.iota {dimensions = array<i32: 1>} : vector<16x16xi32>
    %2 = arith.cmpi sge, %0, %1 : vector<16x16xi32>
    %cst = arith.constant 0.000000e+00 : f32
    %cst_0 = arith.constant 0xFF800000 : f32
    %3 = vector.broadcast %cst : f32 to vector<16x16xf32>
    %4 = vector.broadcast %cst_0 : f32 to vector<16x16xf32>
    %5 = arith.select %2, %3, %4 : vector<16x16xi1>, vector<16x16xf32>
    %c0 = arith.constant 0 : index
    %c0_1 = arith.constant 0 : index
    %c0_2 = arith.constant 0 : index
    %6 = vector.load %arg1[%c0, %c0_1, %c0_2] : memref<1x16x128xf32, #tpu.memory_space<vmem>>, vector<1x16x32xf32>
    %7 = vector.shape_cast %6 : vector<1x16x32xf32> to vector<16x32xf32>
    %cst_3 = arith.constant 0.176776692 : f32
    %8 = vector.broadcast %cst_3 : f32 to vector<16x32xf32>
    %9 = arith.mulf %7, %8 : vector<16x32xf32>
    %10 = arith.truncf %9 : vector<16x32xf32> to vector<16x32xbf16>
    %c0_4 = arith.constant 0 : index
    %c0_5 = arith.constant 0 : index
    %c0_6 = arith.constant 0 : index
    %11 = vector.load %arg2[%c0_4, %c0_5, %c0_6] : memref<1x16x128xf32, #tpu.memory_space<vmem>>, vector<1x16x32xf32>
    %12 = vector.shape_cast %11 : vector<1x16x32xf32> to vector<16x32xf32>
    %13 = arith.truncf %12 : vector<16x32xf32> to vector<16x32xbf16>
    %c0_7 = arith.constant 0 : index
    %c0_8 = arith.constant 0 : index
    %c0_9 = arith.constant 0 : index
    %14 = vector.load %arg3[%c0_7, %c0_8, %c0_9] : memref<1x16x128xf32, #tpu.memory_space<vmem>>, vector<1x16x32xf32>
    %15 = vector.shape_cast %14 : vector<1x16x32xf32> to vector<16x32xf32>
    %16 = arith.truncf %15 : vector<16x32xf32> to vector<16x32xbf16>
    %cst_10 = arith.constant dense<0.000000e+00> : vector<16x16xf32>
    %17 = tpu.matmul %10, %13, %cst_10 {dimension_numbers = #tpu.dot_dimension_numbers<[1], [1], [0], [0], [0, 0, 1, 0], [], []>} : vector<16x32xbf16>, vector<16x32xbf16>, vector<16x16xf32> -> vector<16x16xf32>
    %18 = arith.addf %17, %5 : vector<16x16xf32>
    %cst_11 = arith.constant dense<0xFF800000> : vector<16xf32>
    %19 = vector.multi_reduction <maximumf>, %18, %cst_11 [1] : vector<16x16xf32> to vector<16xf32>
    %20 = vector.shape_cast %19 : vector<16xf32> to vector<16x1xf32>
    %21 = vector.broadcast %20 : vector<16x1xf32> to vector<16x16xf32>
    %22 = arith.subf %18, %21 : vector<16x16xf32>
    %23 = math.exp %22 : vector<16x16xf32>
    %cst_12 = arith.constant dense<0.000000e+00> : vector<16xf32>
    %24 = vector.multi_reduction <add>, %23, %cst_12 [1] : vector<16x16xf32> to vector<16xf32>
    %25 = vector.shape_cast %24 : vector<16xf32> to vector<16x1xf32>
    %26 = tpu.reciprocal %25 {approx = true} : vector<16x1xf32> -> vector<16x1xf32>
    %27 = vector.broadcast %26 : vector<16x1xf32> to vector<16x16xf32>
    %28 = arith.mulf %23, %27 : vector<16x16xf32>
    %29 = arith.truncf %28 : vector<16x16xf32> to vector<16x16xbf16>
    %cst_13 = arith.constant dense<0.000000e+00> : vector<16x32xf32>
    %30 = tpu.matmul %29, %16, %cst_13 {dimension_numbers = #tpu.dot_dimension_numbers<[1], [0], [0], [1], [0, 0, 1, 1], [], []>} : vector<16x16xbf16>, vector<16x32xbf16>, vector<16x32xf32> -> vector<16x32xf32>
    %c0_14 = arith.constant 0 : index
    %c0_15 = arith.constant 0 : index
    %c0_16 = arith.constant 0 : index
    %31 = vector.load %arg4[%c0_14, %c0_15, %c0_16] : memref<1x16x128xf32, #tpu.memory_space<vmem>>, vector<1x16x32xf32>
    %32 = vector.shape_cast %31 : vector<1x16x32xf32> to vector<16x32xf32>
    %33 = vector.shape_cast %30 : vector<16x32xf32> to vector<1x16x32xf32>
    tpu.vector_store %arg4[%c0_14, %c0_15, %c0_16], %33 {strides = array<i32>} : memref<1x16x128xf32, #tpu.memory_space<vmem>>, vector<1x16x32xf32>,
    %c0_17 = arith.constant 0 : index
    %c0_18 = arith.constant 0 : index
    %c32 = arith.constant 32 : index
    %34 = vector.load %arg1[%c0_17, %c0_18, %c32] : memref<1x16x128xf32, #tpu.memory_space<vmem>>, vector<1x16x32xf32>
    %35 = vector.shape_cast %34 : vector<1x16x32xf32> to vector<16x32xf32>
    %cst_19 = arith.constant 0.176776692 : f32
    %36 = vector.broadcast %cst_19 : f32 to vector<16x32xf32>
    %37 = arith.mulf %35, %36 : vector<16x32xf32>
    %38 = arith.truncf %37 : vector<16x32xf32> to vector<16x32xbf16>
    %c0_20 = arith.constant 0 : index
    %c0_21 = arith.constant 0 : index
    %c32_22 = arith.constant 32 : index
    %39 = vector.load %arg2[%c0_20, %c0_21, %c32_22] : memref<1x16x128xf32, #tpu.memory_space<vmem>>, vector<1x16x32xf32>
    %40 = vector.shape_cast %39 : vector<1x16x32xf32> to vector<16x32xf32>
    %41 = arith.truncf %40 : vector<16x32xf32> to vector<16x32xbf16>
    %c0_23 = arith.constant 0 : index
    %c0_24 = arith.constant 0 : index
    %c32_25 = arith.constant 32 : index
    %42 = vector.load %arg3[%c0_23, %c0_24, %c32_25] : memref<1x16x128xf32, #tpu.memory_space<vmem>>, vector<1x16x32xf32>
    %43 = vector.shape_cast %42 : vector<1x16x32xf32> to vector<16x32xf32>
    %44 = arith.truncf %43 : vector<16x32xf32> to vector<16x32xbf16>
    %cst_26 = arith.constant dense<0.000000e+00> : vector<16x16xf32>
    %45 = tpu.matmul %38, %41, %cst_26 {dimension_numbers = #tpu.dot_dimension_numbers<[1], [1], [0], [0], [0, 0, 1, 0], [], []>} : vector<16x32xbf16>, vector<16x32xbf16>, vector<16x16xf32> -> vector<16x16xf32>
    %46 = arith.addf %45, %5 : vector<16x16xf32>
    %cst_27 = arith.constant dense<0xFF800000> : vector<16xf32>
    %47 = vector.multi_reduction <maximumf>, %46, %cst_27 [1] : vector<16x16xf32> to vector<16xf32>
    %48 = vector.shape_cast %47 : vector<16xf32> to vector<16x1xf32>
    %49 = vector.broadcast %48 : vector<16x1xf32> to vector<16x16xf32>
    %50 = arith.subf %46, %49 : vector<16x16xf32>
    %51 = math.exp %50 : vector<16x16xf32>
    %cst_28 = arith.constant dense<0.000000e+00> : vector<16xf32>
    %52 = vector.multi_reduction <add>, %51, %cst_28 [1] : vector<16x16xf32> to vector<16xf32>
    %53 = vector.shape_cast %52 : vector<16xf32> to vector<16x1xf32>
    %54 = tpu.reciprocal %53 {approx = true} : vector<16x1xf32> -> vector<16x1xf32>
    %55 = vector.broadcast %54 : vector<16x1xf32> to vector<16x16xf32>
    %56 = arith.mulf %51, %55 : vector<16x16xf32>
    %57 = arith.truncf %56 : vector<16x16xf32> to vector<16x16xbf16>
    %cst_29 = arith.constant dense<0.000000e+00> : vector<16x32xf32>
    %58 = tpu.matmul %57, %44, %cst_29 {dimension_numbers = #tpu.dot_dimension_numbers<[1], [0], [0], [1], [0, 0, 1, 1], [], []>} : vector<16x16xbf16>, vector<16x32xbf16>, vector<16x32xf32> -> vector<16x32xf32>
    %c0_30 = arith.constant 0 : index
    %c0_31 = arith.constant 0 : index
    %c32_32 = arith.constant 32 : index
    %59 = vector.load %arg4[%c0_30, %c0_31, %c32_32] : memref<1x16x128xf32, #tpu.memory_space<vmem>>, vector<1x16x32xf32>
    %60 = vector.shape_cast %59 : vector<1x16x32xf32> to vector<16x32xf32>
    %61 = vector.shape_cast %58 : vector<16x32xf32> to vector<1x16x32xf32>
    tpu.vector_store %arg4[%c0_30, %c0_31, %c32_32], %61 {strides = array<i32>} : memref<1x16x128xf32, #tpu.memory_space<vmem>>, vector<1x16x32xf32>,
    %c0_33 = arith.constant 0 : index
    %c0_34 = arith.constant 0 : index
    %c64 = arith.constant 64 : index
    %62 = vector.load %arg1[%c0_33, %c0_34, %c64] : memref<1x16x128xf32, #tpu.memory_space<vmem>>, vector<1x16x32xf32>
    %63 = vector.shape_cast %62 : vector<1x16x32xf32> to vector<16x32xf32>
    %cst_35 = arith.constant 0.176776692 : f32
    %64 = vector.broadcast %cst_35 : f32 to vector<16x32xf32>
    %65 = arith.mulf %63, %64 : vector<16x32xf32>
    %66 = arith.truncf %65 : vector<16x32xf32> to vector<16x32xbf16>
    %c0_36 = arith.constant 0 : index
    %c0_37 = arith.constant 0 : index
    %c64_38 = arith.constant 64 : index
    %67 = vector.load %arg2[%c0_36, %c0_37, %c64_38] : memref<1x16x128xf32, #tpu.memory_space<vmem>>, vector<1x16x32xf32>
    %68 = vector.shape_cast %67 : vector<1x16x32xf32> to vector<16x32xf32>
    %69 = arith.truncf %68 : vector<16x32xf32> to vector<16x32xbf16>
    %c0_39 = arith.constant 0 : index
    %c0_40 = arith.constant 0 : index
    %c64_41 = arith.constant 64 : index
    %70 = vector.load %arg3[%c0_39, %c0_40, %c64_41] : memref<1x16x128xf32, #tpu.memory_space<vmem>>, vector<1x16x32xf32>
    %71 = vector.shape_cast %70 : vector<1x16x32xf32> to vector<16x32xf32>
    %72 = arith.truncf %71 : vector<16x32xf32> to vector<16x32xbf16>
    %cst_42 = arith.constant dense<0.000000e+00> : vector<16x16xf32>
    %73 = tpu.matmul %66, %69, %cst_42 {dimension_numbers = #tpu.dot_dimension_numbers<[1], [1], [0], [0], [0, 0, 1, 0], [], []>} : vector<16x32xbf16>, vector<16x32xbf16>, vector<16x16xf32> -> vector<16x16xf32>
    %74 = arith.addf %73, %5 : vector<16x16xf32>
    %cst_43 = arith.constant dense<0xFF800000> : vector<16xf32>
    %75 = vector.multi_reduction <maximumf>, %74, %cst_43 [1] : vector<16x16xf32> to vector<16xf32>
    %76 = vector.shape_cast %75 : vector<16xf32> to vector<16x1xf32>
    %77 = vector.broadcast %76 : vector<16x1xf32> to vector<16x16xf32>
    %78 = arith.subf %74, %77 : vector<16x16xf32>
    %79 = math.exp %78 : vector<16x16xf32>
    %cst_44 = arith.constant dense<0.000000e+00> : vector<16xf32>
    %80 = vector.multi_reduction <add>, %79, %cst_44 [1] : vector<16x16xf32> to vector<16xf32>
    %81 = vector.shape_cast %80 : vector<16xf32> to vector<16x1xf32>
    %82 = tpu.reciprocal %81 {approx = true} : vector<16x1xf32> -> vector<16x1xf32>
    %83 = vector.broadcast %82 : vector<16x1xf32> to vector<16x16xf32>
    %84 = arith.mulf %79, %83 : vector<16x16xf32>
    %85 = arith.truncf %84 : vector<16x16xf32> to vector<16x16xbf16>
    %cst_45 = arith.constant dense<0.000000e+00> : vector<16x32xf32>
    %86 = tpu.matmul %85, %72, %cst_45 {dimension_numbers = #tpu.dot_dimension_numbers<[1], [0], [0], [1], [0, 0, 1, 1], [], []>} : vector<16x16xbf16>, vector<16x32xbf16>, vector<16x32xf32> -> vector<16x32xf32>
    %c0_46 = arith.constant 0 : index
    %c0_47 = arith.constant 0 : index
    %c64_48 = arith.constant 64 : index
    %87 = vector.load %arg4[%c0_46, %c0_47, %c64_48] : memref<1x16x128xf32, #tpu.memory_space<vmem>>, vector<1x16x32xf32>
    %88 = vector.shape_cast %87 : vector<1x16x32xf32> to vector<16x32xf32>
    %89 = vector.shape_cast %86 : vector<16x32xf32> to vector<1x16x32xf32>
    tpu.vector_store %arg4[%c0_46, %c0_47, %c64_48], %89 {strides = array<i32>} : memref<1x16x128xf32, #tpu.memory_space<vmem>>, vector<1x16x32xf32>,
    %c0_49 = arith.constant 0 : index
    %c0_50 = arith.constant 0 : index
    %c96 = arith.constant 96 : index
    %90 = vector.load %arg1[%c0_49, %c0_50, %c96] : memref<1x16x128xf32, #tpu.memory_space<vmem>>, vector<1x16x32xf32>
    %91 = vector.shape_cast %90 : vector<1x16x32xf32> to vector<16x32xf32>
    %cst_51 = arith.constant 0.176776692 : f32
    %92 = vector.broadcast %cst_51 : f32 to vector<16x32xf32>
    %93 = arith.mulf %91, %92 : vector<16x32xf32>
    %94 = arith.truncf %93 : vector<16x32xf32> to vector<16x32xbf16>
    %c0_52 = arith.constant 0 : index
    %c0_53 = arith.constant 0 : index
    %c96_54 = arith.constant 96 : index
    %95 = vector.load %arg2[%c0_52, %c0_53, %c96_54] : memref<1x16x128xf32, #tpu.memory_space<vmem>>, vector<1x16x32xf32>
    %96 = vector.shape_cast %95 : vector<1x16x32xf32> to vector<16x32xf32>
    %97 = arith.truncf %96 : vector<16x32xf32> to vector<16x32xbf16>
    %c0_55 = arith.constant 0 : index
    %c0_56 = arith.constant 0 : index
    %c96_57 = arith.constant 96 : index
    %98 = vector.load %arg3[%c0_55, %c0_56, %c96_57] : memref<1x16x128xf32, #tpu.memory_space<vmem>>, vector<1x16x32xf32>
    %99 = vector.shape_cast %98 : vector<1x16x32xf32> to vector<16x32xf32>
    %100 = arith.truncf %99 : vector<16x32xf32> to vector<16x32xbf16>
    %cst_58 = arith.constant dense<0.000000e+00> : vector<16x16xf32>
    %101 = tpu.matmul %94, %97, %cst_58 {dimension_numbers = #tpu.dot_dimension_numbers<[1], [1], [0], [0], [0, 0, 1, 0], [], []>} : vector<16x32xbf16>, vector<16x32xbf16>, vector<16x16xf32> -> vector<16x16xf32>
    %102 = arith.addf %101, %5 : vector<16x16xf32>
    %cst_59 = arith.constant dense<0xFF800000> : vector<16xf32>
    %103 = vector.multi_reduction <maximumf>, %102, %cst_59 [1] : vector<16x16xf32> to vector<16xf32>
    %104 = vector.shape_cast %103 : vector<16xf32> to vector<16x1xf32>
    %105 = vector.broadcast %104 : vector<16x1xf32> to vector<16x16xf32>
    %106 = arith.subf %102, %105 : vector<16x16xf32>
    %107 = math.exp %106 : vector<16x16xf32>
    %cst_60 = arith.constant dense<0.000000e+00> : vector<16xf32>
    %108 = vector.multi_reduction <add>, %107, %cst_60 [1] : vector<16x16xf32> to vector<16xf32>
    %109 = vector.shape_cast %108 : vector<16xf32> to vector<16x1xf32>
    %110 = tpu.reciprocal %109 {approx = true} : vector<16x1xf32> -> vector<16x1xf32>
    %111 = vector.broadcast %110 : vector<16x1xf32> to vector<16x16xf32>
    %112 = arith.mulf %107, %111 : vector<16x16xf32>
    %113 = arith.truncf %112 : vector<16x16xf32> to vector<16x16xbf16>
    %cst_61 = arith.constant dense<0.000000e+00> : vector<16x32xf32>
    %114 = tpu.matmul %113, %100, %cst_61 {dimension_numbers = #tpu.dot_dimension_numbers<[1], [0], [0], [1], [0, 0, 1, 1], [], []>} : vector<16x16xbf16>, vector<16x32xbf16>, vector<16x32xf32> -> vector<16x32xf32>
    %c0_62 = arith.constant 0 : index
    %c0_63 = arith.constant 0 : index
    %c96_64 = arith.constant 96 : index
    %115 = vector.load %arg4[%c0_62, %c0_63, %c96_64] : memref<1x16x128xf32, #tpu.memory_space<vmem>>, vector<1x16x32xf32>
    %116 = vector.shape_cast %115 : vector<1x16x32xf32> to vector<16x32xf32>
    %117 = vector.shape_cast %114 : vector<16x32xf32> to vector<1x16x32xf32>
    tpu.vector_store %arg4[%c0_62, %c0_63, %c96_64], %117 {strides = array<i32>} : memref<1x16x128xf32, #tpu.memory_space<vmem>>, vector<1x16x32xf32>,
    return
  }
  func.func @transform_0(%arg0: i32) -> (i32, i32, i32) {
    %c0_i32 = arith.constant 0 : i32
    %c0_i32_0 = arith.constant 0 : i32
    %c0_i32_1 = arith.constant 0 : i32
    return %arg0, %c0_i32, %c0_i32_0 : i32, i32, i32
  }
  func.func @transform_1(%arg0: i32) -> (i32, i32, i32) {
    %c0_i32 = arith.constant 0 : i32
    %c1_i32 = arith.constant 1 : i32
    %c0_i32_0 = arith.constant 0 : i32
    return %arg0, %c0_i32, %c1_i32 : i32, i32, i32
  }
  func.func @transform_2(%arg0: i32) -> (i32, i32, i32) {
    %c0_i32 = arith.constant 0 : i32
    %c2_i32 = arith.constant 2 : i32
    %c0_i32_0 = arith.constant 0 : i32
    return %arg0, %c0_i32, %c2_i32 : i32, i32, i32
  }
  func.func @transform_3(%arg0: i32) -> (i32, i32, i32) {
    %c0_i32 = arith.constant 0 : i32
    %c0_i32_0 = arith.constant 0 : i32
    %c0_i32_1 = arith.constant 0 : i32
    return %arg0, %c0_i32, %c0_i32_0 : i32, i32, i32
  }
}

module attributes {stable_mosaic.version = 11 : i64} {
  func.func @layernorm_kernel(%arg0: i32, %arg1: memref<32x128xf32, #tpu.memory_space<vmem>>, %arg2: memref<1x128xf32, #tpu.memory_space<vmem>>, %arg3: memref<1x128xf32, #tpu.memory_space<vmem>>, %arg4: memref<32x128xf32, #tpu.memory_space<vmem>>) attributes {dimension_semantics = [#tpu.dimension_semantics<parallel>], iteration_bounds = array<i64: 1>, scalar_prefetch = 0 : i64, scratch_operands = 0 : i64, tpu.core_type = #tpu.core_type<tc>, window_params = [{transform_indices = @transform_0, window_bounds = array<i64: 32, 128>}, {pipeline_mode = #tpu.pipeline_mode<synchronous>, transform_indices = @transform_1, window_bounds = array<i64: 1, 128>}, {pipeline_mode = #tpu.pipeline_mode<synchronous>, transform_indices = @transform_2, window_bounds = array<i64: 1, 128>}, {transform_indices = @transform_3, window_bounds = array<i64: 32, 128>}]} {
    %c0 = arith.constant 0 : index
    %c0_0 = arith.constant 0 : index
    %0 = vector.load %arg1[%c0, %c0_0] : memref<32x128xf32, #tpu.memory_space<vmem>>, vector<32x128xf32>
    %cst = arith.constant dense<0.000000e+00> : vector<32xf32>
    %1 = vector.multi_reduction <add>, %0, %cst [1] : vector<32x128xf32> to vector<32xf32>
    %2 = vector.shape_cast %1 : vector<32xf32> to vector<32x1xf32>
    %cst_1 = arith.constant 1.280000e+02 : f32
    %3 = vector.broadcast %cst_1 : f32 to vector<32x1xf32>
    %4 = arith.divf %2, %3 : vector<32x1xf32>
    %5 = vector.broadcast %4 : vector<32x1xf32> to vector<32x128xf32>
    %6 = arith.subf %0, %5 : vector<32x128xf32>
    %7 = arith.mulf %6, %6 : vector<32x128xf32>
    %cst_2 = arith.constant dense<0.000000e+00> : vector<32xf32>
    %8 = vector.multi_reduction <add>, %7, %cst_2 [1] : vector<32x128xf32> to vector<32xf32>
    %9 = vector.shape_cast %8 : vector<32xf32> to vector<32x1xf32>
    %cst_3 = arith.constant 1.280000e+02 : f32
    %10 = vector.broadcast %cst_3 : f32 to vector<32x1xf32>
    %11 = arith.divf %9, %10 : vector<32x1xf32>
    %cst_4 = arith.constant 9.99999974E-6 : f32
    %12 = vector.broadcast %cst_4 : f32 to vector<32x1xf32>
    %13 = arith.addf %11, %12 : vector<32x1xf32>
    %14 = math.rsqrt %13 : vector<32x1xf32>
    %15 = vector.broadcast %14 : vector<32x1xf32> to vector<32x128xf32>
    %16 = arith.mulf %6, %15 : vector<32x128xf32>
    %c0_5 = arith.constant 0 : index
    %c0_6 = arith.constant 0 : index
    %17 = vector.load %arg2[%c0_5, %c0_6] : memref<1x128xf32, #tpu.memory_space<vmem>>, vector<1x128xf32>
    %18 = vector.broadcast %17 : vector<1x128xf32> to vector<32x128xf32>
    %19 = arith.mulf %16, %18 : vector<32x128xf32>
    %c0_7 = arith.constant 0 : index
    %c0_8 = arith.constant 0 : index
    %20 = vector.load %arg3[%c0_7, %c0_8] : memref<1x128xf32, #tpu.memory_space<vmem>>, vector<1x128xf32>
    %21 = vector.broadcast %20 : vector<1x128xf32> to vector<32x128xf32>
    %22 = arith.addf %19, %21 : vector<32x128xf32>
    %c0_9 = arith.constant 0 : index
    %c0_10 = arith.constant 0 : index
    %23 = vector.load %arg4[%c0_9, %c0_10] : memref<32x128xf32, #tpu.memory_space<vmem>>, vector<32x128xf32>
    tpu.vector_store %arg4[%c0_9, %c0_10], %22 {strides = array<i32>} : memref<32x128xf32, #tpu.memory_space<vmem>>, vector<32x128xf32>,
    return
  }
  func.func @transform_0(%arg0: i32) -> (i32, i32) {
    %c0_i32 = arith.constant 0 : i32
    %c0_i32_0 = arith.constant 0 : i32
    return %arg0, %c0_i32 : i32, i32
  }
  func.func @transform_1(%arg0: i32) -> (i32, i32) {
    %c0_i32 = arith.constant 0 : i32
    %c0_i32_0 = arith.constant 0 : i32
    %c0_i32_1 = arith.constant 0 : i32
    return %c0_i32, %c0_i32_0 : i32, i32
  }
  func.func @transform_2(%arg0: i32) -> (i32, i32) {
    %c0_i32 = arith.constant 0 : i32
    %c0_i32_0 = arith.constant 0 : i32
    %c0_i32_1 = arith.constant 0 : i32
    return %c0_i32, %c0_i32_0 : i32, i32
  }
  func.func @transform_3(%arg0: i32) -> (i32, i32) {
    %c0_i32 = arith.constant 0 : i32
    %c0_i32_0 = arith.constant 0 : i32
    return %arg0, %c0_i32 : i32, i32
  }
}

module attributes {stable_mosaic.version = 11 : i64} {
  func.func @linear_kernel(%arg0: i32, %arg1: i32, %arg2: i32, %arg3: memref<32x128xf32, #tpu.memory_space<vmem>>, %arg4: memref<128x128xbf16, #tpu.memory_space<vmem>>, %arg5: memref<1x128xf32, #tpu.memory_space<vmem>>, %arg6: memref<32x128xf32, #tpu.memory_space<vmem>>, %arg7: memref<32x128xf32, #tpu.memory_space<vmem>>) attributes {dimension_semantics = [#tpu.dimension_semantics<parallel>, #tpu.dimension_semantics<parallel>, #tpu.dimension_semantics<arbitrary>], iteration_bounds = array<i64: 1, 3, 1>, scalar_prefetch = 0 : i64, scratch_operands = 1 : i64, tpu.core_type = #tpu.core_type<tc>, window_params = [{transform_indices = @transform_0, window_bounds = array<i64: 32, 128>}, {transform_indices = @transform_1, window_bounds = array<i64: 128, 128>}, {transform_indices = @transform_2, window_bounds = array<i64: 1, 128>}, {transform_indices = @transform_3, window_bounds = array<i64: 32, 128>}]} {
    %c0_i32 = arith.constant 0 : i32
    %0 = arith.cmpi eq, %arg2, %c0_i32 : i32
    %1 = arith.extui %0 : i1 to i32
    %c0_i32_0 = arith.constant 0 : i32
    %2 = arith.cmpi ne, %1, %c0_i32_0 : i32
    scf.if %2 {
      %cst_10 = arith.constant 0.000000e+00 : f32
      %13 = vector.broadcast %cst_10 : f32 to vector<32x128xf32>
      %c0_11 = arith.constant 0 : index
      %c0_12 = arith.constant 0 : index
      %14 = vector.load %arg7[%c0_11, %c0_12] : memref<32x128xf32, #tpu.memory_space<vmem>>, vector<32x128xf32>
      tpu.vector_store %arg7[%c0_11, %c0_12], %13 {strides = array<i32>} : memref<32x128xf32, #tpu.memory_space<vmem>>, vector<32x128xf32>,
    } else {
    }
    %c0 = arith.constant 0 : index
    %c0_1 = arith.constant 0 : index
    %3 = vector.load %arg7[%c0, %c0_1] : memref<32x128xf32, #tpu.memory_space<vmem>>, vector<32x128xf32>
    %c0_2 = arith.constant 0 : index
    %c0_3 = arith.constant 0 : index
    %4 = vector.load %arg3[%c0_2, %c0_3] : memref<32x128xf32, #tpu.memory_space<vmem>>, vector<32x128xf32>
    %5 = arith.truncf %4 : vector<32x128xf32> to vector<32x128xbf16>
    %c0_4 = arith.constant 0 : index
    %c0_5 = arith.constant 0 : index
    %6 = vector.load %arg4[%c0_4, %c0_5] : memref<128x128xbf16, #tpu.memory_space<vmem>>, vector<128x128xbf16>
    %cst = arith.constant dense<0.000000e+00> : vector<32x128xf32>
    %7 = tpu.matmul %5, %6, %cst {dimension_numbers = #tpu.dot_dimension_numbers<[1], [0], [0], [1], [0, 0, 1, 1], [], []>} : vector<32x128xbf16>, vector<128x128xbf16>, vector<32x128xf32> -> vector<32x128xf32>
    %8 = arith.addf %3, %7 : vector<32x128xf32>
    %c0_6 = arith.constant 0 : index
    %c0_7 = arith.constant 0 : index
    %9 = vector.load %arg7[%c0_6, %c0_7] : memref<32x128xf32, #tpu.memory_space<vmem>>, vector<32x128xf32>
    tpu.vector_store %arg7[%c0_6, %c0_7], %8 {strides = array<i32>} : memref<32x128xf32, #tpu.memory_space<vmem>>, vector<32x128xf32>,
    %c0_i32_8 = arith.constant 0 : i32
    %10 = arith.cmpi eq, %arg2, %c0_i32_8 : i32
    %11 = arith.extui %10 : i1 to i32
    %c0_i32_9 = arith.constant 0 : i32
    %12 = arith.cmpi ne, %11, %c0_i32_9 : i32
    scf.if %12 {
      %c0_10 = arith.constant 0 : index
      %c0_11 = arith.constant 0 : index
      %13 = vector.load %arg7[%c0_10, %c0_11] : memref<32x128xf32, #tpu.memory_space<vmem>>, vector<32x128xf32>
      %c0_12 = arith.constant 0 : index
      %c0_13 = arith.constant 0 : index
      %14 = vector.load %arg5[%c0_12, %c0_13] : memref<1x128xf32, #tpu.memory_space<vmem>>, vector<1x128xf32>
      %15 = vector.broadcast %14 : vector<1x128xf32> to vector<32x128xf32>
      %16 = arith.addf %13, %15 : vector<32x128xf32>
      %c0_14 = arith.constant 0 : index
      %c0_15 = arith.constant 0 : index
      %17 = vector.load %arg6[%c0_14, %c0_15] : memref<32x128xf32, #tpu.memory_space<vmem>>, vector<32x128xf32>
      tpu.vector_store %arg6[%c0_14, %c0_15], %16 {strides = array<i32>} : memref<32x128xf32, #tpu.memory_space<vmem>>, vector<32x128xf32>,
    } else {
    }
    return
  }
  func.func @transform_0(%arg0: i32, %arg1: i32, %arg2: i32) -> (i32, i32) {
    %c0_i32 = arith.constant 0 : i32
    return %arg0, %arg2 : i32, i32
  }
  func.func @transform_1(%arg0: i32, %arg1: i32, %arg2: i32) -> (i32, i32) {
    %c0_i32 = arith.constant 0 : i32
    return %arg2, %arg1 : i32, i32
  }
  func.func @transform_2(%arg0: i32, %arg1: i32, %arg2: i32) -> (i32, i32) {
    %c0_i32 = arith.constant 0 : i32
    %c0_i32_0 = arith.constant 0 : i32
    return %c0_i32, %arg1 : i32, i32
  }
  func.func @transform_3(%arg0: i32, %arg1: i32, %arg2: i32) -> (i32, i32) {
    %c0_i32 = arith.constant 0 : i32
    return %arg0, %arg1 : i32, i32
  }
}

module attributes {stable_mosaic.version = 11 : i64} {
  func.func @linear_kernel(%arg0: i32, %arg1: i32, %arg2: i32, %arg3: memref<32x128xf32, #tpu.memory_space<vmem>>, %arg4: memref<128x128xbf16, #tpu.memory_space<vmem>>, %arg5: memref<1x128xf32, #tpu.memory_space<vmem>>, %arg6: memref<32x128xf32, #tpu.memory_space<vmem>>, %arg7: memref<32x128xf32, #tpu.memory_space<vmem>>) attributes {dimension_semantics = [#tpu.dimension_semantics<parallel>, #tpu.dimension_semantics<parallel>, #tpu.dimension_semantics<arbitrary>], iteration_bounds = array<i64: 1, 1, 1>, scalar_prefetch = 0 : i64, scratch_operands = 1 : i64, tpu.core_type = #tpu.core_type<tc>, window_params = [{transform_indices = @transform_0, window_bounds = array<i64: 32, 128>}, {transform_indices = @transform_1, window_bounds = array<i64: 128, 128>}, {transform_indices = @transform_2, window_bounds = array<i64: 1, 128>}, {transform_indices = @transform_3, window_bounds = array<i64: 32, 128>}]} {
    %c0_i32 = arith.constant 0 : i32
    %0 = arith.cmpi eq, %arg2, %c0_i32 : i32
    %1 = arith.extui %0 : i1 to i32
    %c0_i32_0 = arith.constant 0 : i32
    %2 = arith.cmpi ne, %1, %c0_i32_0 : i32
    scf.if %2 {
      %cst_10 = arith.constant 0.000000e+00 : f32
      %13 = vector.broadcast %cst_10 : f32 to vector<32x128xf32>
      %c0_11 = arith.constant 0 : index
      %c0_12 = arith.constant 0 : index
      %14 = vector.load %arg7[%c0_11, %c0_12] : memref<32x128xf32, #tpu.memory_space<vmem>>, vector<32x128xf32>
      tpu.vector_store %arg7[%c0_11, %c0_12], %13 {strides = array<i32>} : memref<32x128xf32, #tpu.memory_space<vmem>>, vector<32x128xf32>,
    } else {
    }
    %c0 = arith.constant 0 : index
    %c0_1 = arith.constant 0 : index
    %3 = vector.load %arg7[%c0, %c0_1] : memref<32x128xf32, #tpu.memory_space<vmem>>, vector<32x128xf32>
    %c0_2 = arith.constant 0 : index
    %c0_3 = arith.constant 0 : index
    %4 = vector.load %arg3[%c0_2, %c0_3] : memref<32x128xf32, #tpu.memory_space<vmem>>, vector<32x128xf32>
    %5 = arith.truncf %4 : vector<32x128xf32> to vector<32x128xbf16>
    %c0_4 = arith.constant 0 : index
    %c0_5 = arith.constant 0 : index
    %6 = vector.load %arg4[%c0_4, %c0_5] : memref<128x128xbf16, #tpu.memory_space<vmem>>, vector<128x128xbf16>
    %cst = arith.constant dense<0.000000e+00> : vector<32x128xf32>
    %7 = tpu.matmul %5, %6, %cst {dimension_numbers = #tpu.dot_dimension_numbers<[1], [0], [0], [1], [0, 0, 1, 1], [], []>} : vector<32x128xbf16>, vector<128x128xbf16>, vector<32x128xf32> -> vector<32x128xf32>
    %8 = arith.addf %3, %7 : vector<32x128xf32>
    %c0_6 = arith.constant 0 : index
    %c0_7 = arith.constant 0 : index
    %9 = vector.load %arg7[%c0_6, %c0_7] : memref<32x128xf32, #tpu.memory_space<vmem>>, vector<32x128xf32>
    tpu.vector_store %arg7[%c0_6, %c0_7], %8 {strides = array<i32>} : memref<32x128xf32, #tpu.memory_space<vmem>>, vector<32x128xf32>,
    %c0_i32_8 = arith.constant 0 : i32
    %10 = arith.cmpi eq, %arg2, %c0_i32_8 : i32
    %11 = arith.extui %10 : i1 to i32
    %c0_i32_9 = arith.constant 0 : i32
    %12 = arith.cmpi ne, %11, %c0_i32_9 : i32
    scf.if %12 {
      %c0_10 = arith.constant 0 : index
      %c0_11 = arith.constant 0 : index
      %13 = vector.load %arg7[%c0_10, %c0_11] : memref<32x128xf32, #tpu.memory_space<vmem>>, vector<32x128xf32>
      %c0_12 = arith.constant 0 : index
      %c0_13 = arith.constant 0 : index
      %14 = vector.load %arg5[%c0_12, %c0_13] : memref<1x128xf32, #tpu.memory_space<vmem>>, vector<1x128xf32>
      %15 = vector.broadcast %14 : vector<1x128xf32> to vector<32x128xf32>
      %16 = arith.addf %13, %15 : vector<32x128xf32>
      %c0_14 = arith.constant 0 : index
      %c0_15 = arith.constant 0 : index
      %17 = vector.load %arg6[%c0_14, %c0_15] : memref<32x128xf32, #tpu.memory_space<vmem>>, vector<32x128xf32>
      tpu.vector_store %arg6[%c0_14, %c0_15], %16 {strides = array<i32>} : memref<32x128xf32, #tpu.memory_space<vmem>>, vector<32x128xf32>,
    } else {
    }
    return
  }
  func.func @transform_0(%arg0: i32, %arg1: i32, %arg2: i32) -> (i32, i32) {
    %c0_i32 = arith.constant 0 : i32
    return %arg0, %arg2 : i32, i32
  }
  func.func @transform_1(%arg0: i32, %arg1: i32, %arg2: i32) -> (i32, i32) {
    %c0_i32 = arith.constant 0 : i32
    return %arg2, %arg1 : i32, i32
  }
  func.func @transform_2(%arg0: i32, %arg1: i32, %arg2: i32) -> (i32, i32) {
    %c0_i32 = arith.constant 0 : i32
    %c0_i32_0 = arith.constant 0 : i32
    return %c0_i32, %arg1 : i32, i32
  }
  func.func @transform_3(%arg0: i32, %arg1: i32, %arg2: i32) -> (i32, i32) {
    %c0_i32 = arith.constant 0 : i32
    return %arg0, %arg1 : i32, i32
  }
}

module attributes {stable_mosaic.version = 11 : i64} {
  func.func @linear_kernel(%arg0: i32, %arg1: i32, %arg2: i32, %arg3: memref<32x128xf32, #tpu.memory_space<vmem>>, %arg4: memref<128x256xbf16, #tpu.memory_space<vmem>>, %arg5: memref<1x256xf32, #tpu.memory_space<vmem>>, %arg6: memref<32x256xf32, #tpu.memory_space<vmem>>, %arg7: memref<32x256xf32, #tpu.memory_space<vmem>>) attributes {dimension_semantics = [#tpu.dimension_semantics<parallel>, #tpu.dimension_semantics<parallel>, #tpu.dimension_semantics<arbitrary>], iteration_bounds = array<i64: 1, 2, 1>, scalar_prefetch = 0 : i64, scratch_operands = 1 : i64, tpu.core_type = #tpu.core_type<tc>, window_params = [{transform_indices = @transform_0, window_bounds = array<i64: 32, 128>}, {transform_indices = @transform_1, window_bounds = array<i64: 128, 256>}, {transform_indices = @transform_2, window_bounds = array<i64: 1, 256>}, {transform_indices = @transform_3, window_bounds = array<i64: 32, 256>}]} {
    %c0_i32 = arith.constant 0 : i32
    %0 = arith.cmpi eq, %arg2, %c0_i32 : i32
    %1 = arith.extui %0 : i1 to i32
    %c0_i32_0 = arith.constant 0 : i32
    %2 = arith.cmpi ne, %1, %c0_i32_0 : i32
    scf.if %2 {
      %cst_10 = arith.constant 0.000000e+00 : f32
      %13 = vector.broadcast %cst_10 : f32 to vector<32x256xf32>
      %c0_11 = arith.constant 0 : index
      %c0_12 = arith.constant 0 : index
      %14 = vector.load %arg7[%c0_11, %c0_12] : memref<32x256xf32, #tpu.memory_space<vmem>>, vector<32x256xf32>
      tpu.vector_store %arg7[%c0_11, %c0_12], %13 {strides = array<i32>} : memref<32x256xf32, #tpu.memory_space<vmem>>, vector<32x256xf32>,
    } else {
    }
    %c0 = arith.constant 0 : index
    %c0_1 = arith.constant 0 : index
    %3 = vector.load %arg7[%c0, %c0_1] : memref<32x256xf32, #tpu.memory_space<vmem>>, vector<32x256xf32>
    %c0_2 = arith.constant 0 : index
    %c0_3 = arith.constant 0 : index
    %4 = vector.load %arg3[%c0_2, %c0_3] : memref<32x128xf32, #tpu.memory_space<vmem>>, vector<32x128xf32>
    %5 = arith.truncf %4 : vector<32x128xf32> to vector<32x128xbf16>
    %c0_4 = arith.constant 0 : index
    %c0_5 = arith.constant 0 : index
    %6 = vector.load %arg4[%c0_4, %c0_5] : memref<128x256xbf16, #tpu.memory_space<vmem>>, vector<128x256xbf16>
    %cst = arith.constant dense<0.000000e+00> : vector<32x256xf32>
    %7 = tpu.matmul %5, %6, %cst {dimension_numbers = #tpu.dot_dimension_numbers<[1], [0], [0], [1], [0, 0, 1, 1], [], []>} : vector<32x128xbf16>, vector<128x256xbf16>, vector<32x256xf32> -> vector<32x256xf32>
    %8 = arith.addf %3, %7 : vector<32x256xf32>
    %c0_6 = arith.constant 0 : index
    %c0_7 = arith.constant 0 : index
    %9 = vector.load %arg7[%c0_6, %c0_7] : memref<32x256xf32, #tpu.memory_space<vmem>>, vector<32x256xf32>
    tpu.vector_store %arg7[%c0_6, %c0_7], %8 {strides = array<i32>} : memref<32x256xf32, #tpu.memory_space<vmem>>, vector<32x256xf32>,
    %c0_i32_8 = arith.constant 0 : i32
    %10 = arith.cmpi eq, %arg2, %c0_i32_8 : i32
    %11 = arith.extui %10 : i1 to i32
    %c0_i32_9 = arith.constant 0 : i32
    %12 = arith.cmpi ne, %11, %c0_i32_9 : i32
    scf.if %12 {
      %c0_10 = arith.constant 0 : index
      %c0_11 = arith.constant 0 : index
      %13 = vector.load %arg7[%c0_10, %c0_11] : memref<32x256xf32, #tpu.memory_space<vmem>>, vector<32x256xf32>
      %c0_12 = arith.constant 0 : index
      %c0_13 = arith.constant 0 : index
      %14 = vector.load %arg5[%c0_12, %c0_13] : memref<1x256xf32, #tpu.memory_space<vmem>>, vector<1x256xf32>
      %15 = vector.broadcast %14 : vector<1x256xf32> to vector<32x256xf32>
      %16 = arith.addf %13, %15 : vector<32x256xf32>
      %cst_14 = arith.constant 0.000000e+00 : f32
      %17 = vector.broadcast %cst_14 : f32 to vector<32x256xf32>
      %18 = arith.subf %17, %16 : vector<32x256xf32>
      %19 = math.exp %18 : vector<32x256xf32>
      %cst_15 = arith.constant 1.000000e+00 : f32
      %20 = vector.broadcast %cst_15 : f32 to vector<32x256xf32>
      %21 = arith.addf %20, %19 : vector<32x256xf32>
      %cst_16 = arith.constant 1.000000e+00 : f32
      %22 = vector.broadcast %cst_16 : f32 to vector<32x256xf32>
      %23 = arith.divf %22, %21 : vector<32x256xf32>
      %24 = arith.mulf %16, %23 : vector<32x256xf32>
      %c0_17 = arith.constant 0 : index
      %c0_18 = arith.constant 0 : index
      %25 = vector.load %arg6[%c0_17, %c0_18] : memref<32x256xf32, #tpu.memory_space<vmem>>, vector<32x256xf32>
      tpu.vector_store %arg6[%c0_17, %c0_18], %24 {strides = array<i32>} : memref<32x256xf32, #tpu.memory_space<vmem>>, vector<32x256xf32>,
    } else {
    }
    return
  }
  func.func @transform_0(%arg0: i32, %arg1: i32, %arg2: i32) -> (i32, i32) {
    %c0_i32 = arith.constant 0 : i32
    return %arg0, %arg2 : i32, i32
  }
  func.func @transform_1(%arg0: i32, %arg1: i32, %arg2: i32) -> (i32, i32) {
    %c0_i32 = arith.constant 0 : i32
    return %arg2, %arg1 : i32, i32
  }
  func.func @transform_2(%arg0: i32, %arg1: i32, %arg2: i32) -> (i32, i32) {
    %c0_i32 = arith.constant 0 : i32
    %c0_i32_0 = arith.constant 0 : i32
    return %c0_i32, %arg1 : i32, i32
  }
  func.func @transform_3(%arg0: i32, %arg1: i32, %arg2: i32) -> (i32, i32) {
    %c0_i32 = arith.constant 0 : i32
    return %arg0, %arg1 : i32, i32
  }
}

module attributes {stable_mosaic.version = 11 : i64} {
  func.func @linear_kernel(%arg0: i32, %arg1: i32, %arg2: i32, %arg3: memref<32x512xf32, #tpu.memory_space<vmem>>, %arg4: memref<512x128xbf16, #tpu.memory_space<vmem>>, %arg5: memref<1x128xf32, #tpu.memory_space<vmem>>, %arg6: memref<32x128xf32, #tpu.memory_space<vmem>>, %arg7: memref<32x128xf32, #tpu.memory_space<vmem>>) attributes {dimension_semantics = [#tpu.dimension_semantics<parallel>, #tpu.dimension_semantics<parallel>, #tpu.dimension_semantics<arbitrary>], iteration_bounds = array<i64: 1, 1, 1>, scalar_prefetch = 0 : i64, scratch_operands = 1 : i64, tpu.core_type = #tpu.core_type<tc>, window_params = [{transform_indices = @transform_0, window_bounds = array<i64: 32, 512>}, {transform_indices = @transform_1, window_bounds = array<i64: 512, 128>}, {transform_indices = @transform_2, window_bounds = array<i64: 1, 128>}, {transform_indices = @transform_3, window_bounds = array<i64: 32, 128>}]} {
    %c0_i32 = arith.constant 0 : i32
    %0 = arith.cmpi eq, %arg2, %c0_i32 : i32
    %1 = arith.extui %0 : i1 to i32
    %c0_i32_0 = arith.constant 0 : i32
    %2 = arith.cmpi ne, %1, %c0_i32_0 : i32
    scf.if %2 {
      %cst_10 = arith.constant 0.000000e+00 : f32
      %13 = vector.broadcast %cst_10 : f32 to vector<32x128xf32>
      %c0_11 = arith.constant 0 : index
      %c0_12 = arith.constant 0 : index
      %14 = vector.load %arg7[%c0_11, %c0_12] : memref<32x128xf32, #tpu.memory_space<vmem>>, vector<32x128xf32>
      tpu.vector_store %arg7[%c0_11, %c0_12], %13 {strides = array<i32>} : memref<32x128xf32, #tpu.memory_space<vmem>>, vector<32x128xf32>,
    } else {
    }
    %c0 = arith.constant 0 : index
    %c0_1 = arith.constant 0 : index
    %3 = vector.load %arg7[%c0, %c0_1] : memref<32x128xf32, #tpu.memory_space<vmem>>, vector<32x128xf32>
    %c0_2 = arith.constant 0 : index
    %c0_3 = arith.constant 0 : index
    %4 = vector.load %arg3[%c0_2, %c0_3] : memref<32x512xf32, #tpu.memory_space<vmem>>, vector<32x512xf32>
    %5 = arith.truncf %4 : vector<32x512xf32> to vector<32x512xbf16>
    %c0_4 = arith.constant 0 : index
    %c0_5 = arith.constant 0 : index
    %6 = vector.load %arg4[%c0_4, %c0_5] : memref<512x128xbf16, #tpu.memory_space<vmem>>, vector<512x128xbf16>
    %cst = arith.constant dense<0.000000e+00> : vector<32x128xf32>
    %7 = tpu.matmul %5, %6, %cst {dimension_numbers = #tpu.dot_dimension_numbers<[1], [0], [0], [1], [0, 0, 1, 1], [], []>} : vector<32x512xbf16>, vector<512x128xbf16>, vector<32x128xf32> -> vector<32x128xf32>
    %8 = arith.addf %3, %7 : vector<32x128xf32>
    %c0_6 = arith.constant 0 : index
    %c0_7 = arith.constant 0 : index
    %9 = vector.load %arg7[%c0_6, %c0_7] : memref<32x128xf32, #tpu.memory_space<vmem>>, vector<32x128xf32>
    tpu.vector_store %arg7[%c0_6, %c0_7], %8 {strides = array<i32>} : memref<32x128xf32, #tpu.memory_space<vmem>>, vector<32x128xf32>,
    %c0_i32_8 = arith.constant 0 : i32
    %10 = arith.cmpi eq, %arg2, %c0_i32_8 : i32
    %11 = arith.extui %10 : i1 to i32
    %c0_i32_9 = arith.constant 0 : i32
    %12 = arith.cmpi ne, %11, %c0_i32_9 : i32
    scf.if %12 {
      %c0_10 = arith.constant 0 : index
      %c0_11 = arith.constant 0 : index
      %13 = vector.load %arg7[%c0_10, %c0_11] : memref<32x128xf32, #tpu.memory_space<vmem>>, vector<32x128xf32>
      %c0_12 = arith.constant 0 : index
      %c0_13 = arith.constant 0 : index
      %14 = vector.load %arg5[%c0_12, %c0_13] : memref<1x128xf32, #tpu.memory_space<vmem>>, vector<1x128xf32>
      %15 = vector.broadcast %14 : vector<1x128xf32> to vector<32x128xf32>
      %16 = arith.addf %13, %15 : vector<32x128xf32>
      %c0_14 = arith.constant 0 : index
      %c0_15 = arith.constant 0 : index
      %17 = vector.load %arg6[%c0_14, %c0_15] : memref<32x128xf32, #tpu.memory_space<vmem>>, vector<32x128xf32>
      tpu.vector_store %arg6[%c0_14, %c0_15], %16 {strides = array<i32>} : memref<32x128xf32, #tpu.memory_space<vmem>>, vector<32x128xf32>,
    } else {
    }
    return
  }
  func.func @transform_0(%arg0: i32, %arg1: i32, %arg2: i32) -> (i32, i32) {
    %c0_i32 = arith.constant 0 : i32
    return %arg0, %arg2 : i32, i32
  }
  func.func @transform_1(%arg0: i32, %arg1: i32, %arg2: i32) -> (i32, i32) {
    %c0_i32 = arith.constant 0 : i32
    return %arg2, %arg1 : i32, i32
  }
  func.func @transform_2(%arg0: i32, %arg1: i32, %arg2: i32) -> (i32, i32) {
    %c0_i32 = arith.constant 0 : i32
    %c0_i32_0 = arith.constant 0 : i32
    return %c0_i32, %arg1 : i32, i32
  }
  func.func @transform_3(%arg0: i32, %arg1: i32, %arg2: i32) -> (i32, i32) {
    %c0_i32 = arith.constant 0 : i32
    return %arg0, %arg1 : i32, i32
  }
}

</mosaic_0001>

<bundles_post_ra>
// kernel: block_forward.7
= control target key start
LH: loop header
LB: loop body
LE: loop exit
PB: predicated region body
PF: predicated region fallthrough
CT: control target
= control target key end

     0   :  { %s153_s0 = inlined_call_operand.vmem [shape: f32[32,128], index: 0, kind: input, shape index: {}]   ;;  %s154_s1 = inlined_call_operand.vmem [shape: f32[1,128], index: 1, kind: input, shape index: {}]   ;;  %s155_s2 = inlined_call_operand.vmem [shape: f32[1,128], index: 2, kind: input, shape index: {}]   ;;  %s156_s3 = inlined_call_operand.vmem [shape: f32[32,128], index: 3, kind: output, shape index: {}]  }
   0x1   :  { %v14_v0 = vld [vmem:[%s153_s0] sm:$0xff]  ;;  %v16_v1 = vld [vmem:[%s153_s0 + $0x10] sm:$0xff]  ;;  %v15_v2 = vld [vmem:[%s153_s0 + $0x8] sm:$0xff] }
   0x2   :  { %18 = vadd.xlane.f32.xlu0 %v14_v0  ;;  %22 = vadd.xlane.f32.xlu1 %v16_v1  ;;  %v17_v3 = vld [vmem:[%s153_s0 + $0x18] sm:$0xff]  ;;  %v93_v33 = vld [vmem:[%s154_s1] ss:$0 sm:$0xff] }
   0x3   :  { %v94_v35 = vld [vmem:[%s155_s2] ss:$0 sm:$0xff] }
   0x6   :  { %20 = vadd.xlane.f32.xlu0 %v15_v2  ;;  %24 = vadd.xlane.f32.xlu1 %v17_v3 }
  0x8f   :  { %v19_v4 = vpop.xlane.xlu0 %18  ;;  %v23_v5 = vpop.xlane.xlu1 %22 }
  0x90   :  { %v27_v6 = vmul.f32 0.0078125, %v19_v4  ;;  %v29_v7 = vmul.f32 0.0078125, %v23_v5 }
  0x92   :  { %v31_v8 = vsub.f32 %v14_v0, %v27_v6  ;;  %v33_v9 = vsub.f32 %v16_v1, %v29_v7 }
  0x93   :  { %v21_v10 = vpop.xlane.xlu0 %20  ;;  %v25_v11 = vpop.xlane.xlu1 %24 }
  0x94   :  { %v28_v12 = vmul.f32 0.0078125, %v21_v10  ;;  %v35_v13 = vmul.f32 %v31_v8, %v31_v8  ;;  %v30_v14 = vmul.f32 0.0078125, %v25_v11  ;;  %v37_v17 = vmul.f32 %v33_v9, %v33_v9 }
  0x96   :  { %v32_v15 = vsub.f32 %v15_v2, %v28_v12  ;;  %39 = vadd.xlane.f32.xlu0 %v35_v13  ;;  %v34_v16 = vsub.f32 %v17_v3, %v30_v14 }
  0x98   :  { %v36_v18 = vmul.f32 %v32_v15, %v32_v15  ;;  %v38_v19 = vmul.f32 %v34_v16, %v34_v16 }
  0x9a   :  { %43 = vadd.xlane.f32.xlu0 %v37_v17  ;;  %41 = vadd.xlane.f32.xlu1 %v36_v18 }
  0x9e   :  { %45 = vadd.xlane.f32.xlu1 %v38_v19 }
 0x123   :  { %v40_v20 = vpop.xlane.xlu0 %39 }
 0x124   :  { %v47_v21 = vmul.f32 0.0078125, %v40_v20 }
 0x126   :  { %v51_v22 = vadd.f32 1e-05, %v47_v21 }
 0x127   :  { %v42_v23 = vpop.xlane.xlu1 %41  ;;  %v44_v24 = vpop.xlane.xlu0 %43 }
 0x128   :  { %95 = vrsqrt.f32 %v51_v22  ;;  %v48_v25 = vmul.f32 0.0078125, %v42_v23  ;;  %v49_v26 = vmul.f32 0.0078125, %v44_v24 }
 0x12a   :  { %v52_v27 = vadd.f32 1e-05, %v48_v25  ;;  %v53_v28 = vadd.f32 1e-05, %v49_v26 }
 0x12b   :  { %v46_v29 = vpop.xlane.xlu1 %45 }
 0x12c   :  { %97 = vrsqrt.f32 %v52_v27  ;;  %v50_v30 = vmul.f32 0.0078125, %v46_v29 }
 0x12d   :  { %99 = vrsqrt.f32 %v53_v28 }
 0x12e   :  { %v54_v31 = vadd.f32 1e-05, %v50_v30 }
 0x130   :  { %101 = vrsqrt.f32 %v54_v31 }
 0x132   :  { %v96_v32 = vpop.eup %95 }
 0x133   :  { %v59_v34 = vmul.f32 %v96_v32, %v31_v8 }
 0x135   :  { %v70_v36 = vmul.f32 %v93_v33, %v59_v34 }
 0x136   :  { %v98_v37 = vpop.eup %97 }
 0x137   :  { %v100_v38 = vpop.eup %99  ;;  %v81_v39 = vadd.f32 %v94_v35, %v70_v36  ;;  %v60_v40 = vmul.f32 %v98_v37, %v32_v15 }
 0x138   :  { %v61_v41 = vmul.f32 %v100_v38, %v33_v9 }
 0x139   :  { %85 = vst [vmem:[%s156_s3] sm:$0xff] %v81_v39  ;;  %v71_v42 = vmul.f32 %v93_v33, %v60_v40 }
 0x13a   :  { %v102_v43 = vpop.eup %101  ;;  %v72_v44 = vmul.f32 %v93_v33, %v61_v41 }
 0x13b   :  { %v82_v45 = vadd.f32 %v94_v35, %v71_v42  ;;  %v62_v46 = vmul.f32 %v102_v43, %v34_v16 }
 0x13c   :  { %v83_v47 = vadd.f32 %v94_v35, %v72_v44 }
 0x13d   :  { %86 = vst [vmem:[%s156_s3 + $0x8] sm:$0xff] %v82_v45  ;;  %v73_v48 = vmul.f32 %v93_v33, %v62_v46 }
 0x13e   :  { %87 = vst [vmem:[%s156_s3 + $0x10] sm:$0xff] %v83_v47 }
 0x13f   :  { %v84_v49 = vadd.f32 %v94_v35, %v73_v48 }
 0x141   :  { %88 = vst [vmem:[%s156_s3 + $0x18] sm:$0xff] %v84_v49 }

// kernel: block_forward.8
= control target key start
LH: loop header
LB: loop body
LE: loop exit
PB: predicated region body
PF: predicated region fallthrough
CT: control target
= control target key end

     0   :  { %8 = vsyncpa [#allocation4], 0  ;;  %s959_s0 = inlined_call_operand.vmem [shape: f32[32,128], index: 0, kind: input, shape index: {}]   ;;  %s960_s1 = inlined_call_operand.hbm [shape: bf16[128,384], index: 1, kind: input, shape index: {}]   ;;  %s961_s2 = inlined_call_operand.vmem [shape: f32[1,384], index: 2, kind: input, shape index: {}]   ;;  %s962_s3 = inlined_call_operand.vmem [shape: f32[32,384], index: 3, kind: output, shape index: {}]  }
   0x1   :  { %10 = vsyncpa [#allocation4 + $0x1], 0  ;;  %s806_s12 = smov 0   ;;  %s808_s13 = smov 0  }
   0x2   :  { %s810_s14 = smov 0   ;;  %s812_s15 = smov 0  }
   0x3   :  { %s814_s16 = smov 0   ;;  %s816_s17 = smov 0  }
   0x4 LB: > { %s581_s18 = sadd.s32 4294967295, %s780_s17   ;;  %s31_s19 = sadd.s32 1, %s776_s16  ;;  %s780_s17 = sphi %s816_s17, %s16_s17   ;;  %s776_s16 = sphi %s814_s16, %s973_s16   ;;  %s772_s15 = sphi %s812_s15, %s972_s15   ;;  %s768_s14 = sphi %s810_s14, %s971_s14   ;;  %s764_s13 = sphi %s808_s13, %s970_s13   ;;  %s760_s12 = sphi %s806_s12, %s969_s12  }
   0x5   : > { %p33_p0 = scmp.ge.s32.totalorder %s31_s19, 3  ;;  %s72_s20 = sadd.s32 1, %s768_s14 }
   0x6   : > { %p79_p1 = scmp.ne.s32.totalorder %s768_s14, %s764_s13  ;;  %p80_p2 = scmp.eq.s32.totalorder %s780_s17, 0 }
   0x7   : > { %s975_s19 = smov (%p33_p0, %s31_s19), 0  ;;  %p85_p4 = scmp.ne.s32.totalorder %s764_s13, %s760_s12 }
   0x8   : > { %p842_p3 = por %p80_p2, %p79_p1  ;;  %s68_s22 = ssub.s32 %s776_s16, %s975_s19 }
   0x9   : > { %p86_p5 = scmp.eq.s32.totalorder %s581_s18, 0  ;;  %p70_p6 = scmp.eq.s32.totalorder %s68_s22, 0 }
   0xa   : > { %p137_p7 = scmp.eq.s32.totalorder %s581_s18, 2  ;;  %p640_p10 = scmp.lt.s32.totalorder %s780_s17, 3 }
   0xb   : > { %p849_p8 = por %p86_p5, %p85_p4  ;;  %s175_s26 = sand.u32 1, %s768_s14  }
   0xc   : > { %s854_s24 = scalar_select %p70_p6, %s768_s14, %s72_s20  }
   0xd   : > { %p856_p9 = por %p137_p7, %p79_p1  ;;  %s587_s27 = sshll.u32 %s776_s16, 6 }
   0xe   : > { %s586_s28 = sshll.u32 %s175_s26, 6  ;;  %s866_s4 = scalar_lea.hbm %s960_s1, %s587_s27 }
   0xf   : > { %s965_s25 = scalar_select %p856_p9, 1, 0 }
  0x10   : > { %s179_s5 = scalar_lea.vmem [#allocation3], %s586_s28  ;;  %p870_p11 = pnand %p640_p10, %p842_p3 }
  0x11   : > { %s188_s6 = sshll.u32 %s179_s5, 4  ;;  %s877_s8 = scalar_lea.sflag [#allocation4], %s175_s26  ;;  %s874_s6 = int_to_ptr.vmem [resolvable:$true] %s188_s6 }
  0x12   : > { %s700_s9 = scalar_lea.hbm %s866_s4, 1024  ;;  %p702_p0 = pneg %p870_p11 }
  0x13   : > { %p701_p13 = scmp.ne.s32.totalorder %s866_s4, %s700_s9  ;;  %s705_s12 = scalar_lea.hbm %s960_s1, 3072 }
  0x14   : > { %p706_p3 = scmp.lt.u32.totalorder %s866_s4, %s960_s1  ;;  %p707_p4 = scmp.lt.u32.totalorder %s705_s12, %s700_s9 }
  0x15   : > { %p703_p1 = pnand %p702_p0, %p701_p13  ;;  %p709_p6 = scmp.lt.u32.totalorder %s700_s9, %s866_s4 }
  0x16   : > { %p708_p5 = por %p707_p4, %p706_p3 }
  0x17   : > { %p704_p2 = pneg %p703_p1 }
  0x18   : > { %p710_p7 = por %p709_p6, %p708_p5 }
  0x1a   : > { %p711_p10 = pnand %p710_p7, %p704_p2 }
  0x1c   : > { %714 = shalt.err (!%p711_p10)
}
  0x1d   : > { %s715_s21 = scalar_lea.vmem %s874_s6, 1024  ;;  %s782_s22 = smov [#allocation3]  }
  0x1e   : > { %p716_p13 = scmp.ne.s32.totalorder %s874_s6, %s715_s21  ;;  %s720_s26 = sshll.u32 %s782_s22, 4  ;;  %s721_s26 = int_to_ptr.vmem [resolvable:$false] %s720_s26 }
  0x1f   : > { %s722_s27 = scalar_lea.vmem %s721_s26, 2048  ;;  %p723_p9 = scmp.lt.s32.totalorder %s874_s6, %s721_s26 }
  0x20   : > { %p718_p1 = pnand %p716_p13, %p702_p0  ;;  %p724_p3 = scmp.lt.s32.totalorder %s722_s27, %s715_s21 }
  0x22   : > { %p719_p12 = pneg %p718_p1  ;;  %p725_p4 = por %p724_p3, %p723_p9 }
  0x24   : > { %p726_p5 = pnand %p725_p4, %p719_p12 }
  0x26   : > { %729 = shalt.err (!%p726_p5)
}
  0x27   : > { %s783_s28 = smov 192   ;;  %s784_s29 = smov 64  }
  0x28   : > { %s785_s30 = smov 4   ;;  %p202_p0 = scmp.lt.s32.totalorder %s780_s17, 4 }
  0x29   : > { %639 = dma.hbm_to_vmem [thread:$0]  (!%p870_p11), %s866_s4, 1024, %s874_s6, %s877_s8, %s783_s28, %s784_s29, %s785_s30  }
  0x2a   : > { %p967_p2 = scmp.ge.s32.totalorder %s780_s17, 1 }
  0x2c   : > { %p203_p6 = pnand %p967_p2, %p202_p0 }
  0x2d   : > { %s909_s5 = sand.u32 (!%p203_p6), 1, %s764_s13  }
  0x2e   : > { %206 = sbr.rel (%p203_p6) target bundleno = 313 (0x139), region = 32  ;;  %s589_s9 = sshll.u32 (!%p203_p6), %s909_s5, 6 }
  0x2f   : > { %s209_s10 = scalar_lea.sflag (!%p203_p6), [#allocation4], %s909_s5  ;;  %s212_s11 = scalar_lea.vmem (!%p203_p6), [#allocation3], %s589_s9 }
  0x35   : > { %755 = dma.done.wait (%p849_p8), %s209_s10, 1024  }
  0x36   : > { %757 = vsyncadd (%p849_p8), %s209_s10, 4294966272  ;;  %v692_v0 = vld [vmem:[%s212_s11] sm:$0xff]   ;;  %v693_v1 = vld [vmem:[%s212_s11 + $0x8] sm:$0xff]   ;;  %p255_p8 = scmp.lt.s32.totalorder %s772_s15, 2  ;;  %s590_s28 = sshll.u32 %s909_s5, 5 }
  0x37   : > { %614 = vmatprep.subr.bf16.mxu0 %v692_v0  ;;  %v694_v2 = vld [vmem:[%s212_s11 + $0x10] sm:$0xff]   ;;  %v695_v3 = vld [vmem:[%s212_s11 + $0x18] sm:$0xff]   ;;  %v272_v4 = vld [vmem:[%s959_s0] sm:$0xff]  ;;  %s244_s29 = scalar_lea.vmem [#allocation5], %s590_s28  ;;  %p968_p9 = scmp.ne.s32.totalorder %s965_s25, 0 }
  0x38   : > { %615 = vmatpush3.bf16.msra.mxu0 %v692_v0  ;;  %v273_v5 = vld [vmem:[%s959_s0 + $0x8] sm:$0xff]  ;;  %v696_v7 = vld [vmem:[%s212_s11 + $0x20] sm:$0xff]   ;;  %v698_v9 = vld [vmem:[%s212_s11 + $0x30] sm:$0xff]   ;;  %s256_s21 = scalar_select %p255_p8, %s772_s15, 2 }
  0x39   : > { %616 = vmatprep.subr.bf16.mxu0 %v693_v1  ;;  %v276_v6 = vpack.c.bf16 %v273_v5, %v272_v4  ;;  %v697_v8 = vld [vmem:[%s212_s11 + $0x28] sm:$0xff]   ;;  %v699_v10 = vld [vmem:[%s212_s11 + $0x38] sm:$0xff]   ;;  %v274_v11 = vld [vmem:[%s959_s0 + $0x10] sm:$0xff]  ;;  %s601_s30 = sshll.u32 (%p968_p9), %s772_s15, 3 }
  0x3a   : > { %v275_v12 = vld [vmem:[%s959_s0 + $0x18] sm:$0xff]  ;;  %s257_s27 = scalar_lea.vmem %s961_s2, %s256_s21  ;;  %s432_s10 = scalar_lea.vmem (%p968_p9), %s962_s3, %s601_s30 }
  0x3b   : > { %630 = vmatprep.mubr.bf16.mxu0 %v276_v6  ;;  %v277_v13 = vpack.c.bf16 %v275_v12, %v274_v11  ;;  %v599_v14 = vld [vmem:[%s257_s27] ss:$0 sm:$0xff] }
  0x3c   : > { %617 = vmatpush3.bf16.msra.mxu0 %v693_v1 }
  0x3d   : > { %618 = vmatprep.subr.bf16.mxu0 %v694_v2 }
  0x40   : > { %619 = vmatpush3.bf16.msra.mxu0 %v694_v2 }
  0x41   : > { %620 = vmatprep.subr.bf16.mxu0 %v695_v3 }
  0x44   : > { %621 = vmatpush3.bf16.msra.mxu0 %v695_v3 }
  0x45   : > { %622 = vmatprep.subr.bf16.mxu0 %v696_v7 }
  0x48   : > { %623 = vmatpush3.bf16.msra.mxu0 %v696_v7 }
  0x49   : > { %624 = vmatprep.subr.bf16.mxu0 %v697_v8 }
  0x4c   : > { %625 = vmatpush3.bf16.msra.mxu0 %v697_v8 }
  0x4d   : > { %626 = vmatprep.subr.bf16.mxu0 %v698_v9 }
  0x50   : > { %627 = vmatpush3.bf16.msra.mxu0 %v698_v9 }
  0x51   : > { %628 = vmatprep.subr.bf16.mxu0 %v699_v10 }
  0x54   : > { %629 = vmatpush3.bf16.msra.mxu0 %v699_v10 }
  0x57   : > { %631 = vmatmul.mubr.bf16.vlgmr.msra.gmra.mrb[0].mxu0 %v277_v13 }
 0x12a   : > { %v632_v15 = vpop.f32.mrb[0].mxu0  ;;  %427 = sbr.rel (!%p968_p9) target bundleno = 313 (0x139), region = 48 }
 0x12b   : > { %v415_v16 = vadd.f32 %v632_v15, %v599_v14  ;;  %v376_v17 = vpop.f32.mrb[1].mxu0 }
 0x12c   : > { %v413_v18 = vadd.f32 %v599_v14, %v376_v17  ;;  %v633_v19 = vpop.f32.mrb[2].mxu0 }
 0x12d   : > { %419 = vst [vmem:[%s244_s29 + $0x10] sm:$0xff] %v415_v16  ;;  %v416_v20 = vadd.f32 %v633_v19, %v599_v14  ;;  %v379_v21 = vpop.f32.mrb[3].mxu0 }
 0x12e   : > { %417 = vst [vmem:[%s244_s29] sm:$0xff] %v413_v18  ;;  %v414_v22 = vadd.f32 %v599_v14, %v379_v21 }
 0x12f   : > { %420 = vst [vmem:[%s244_s29 + $0x18] sm:$0xff] %v416_v20 }
 0x130   : > { %418 = vst [vmem:[%s244_s29 + $0x8] sm:$0xff] %v414_v22 }
 0x134   : > { %v470_v25 = vld [vmem:[%s244_s29 + $0x10] sm:$0xff] }
 0x135   : > { %v466_v23 = vld [vmem:[%s244_s29] sm:$0xff]  ;;  %471 = vst [vmem:[%s432_s10 + $0x30] sm:$0xff] %v470_v25 }
 0x136   : > { %v472_v26 = vld [vmem:[%s244_s29 + $0x18] sm:$0xff]  ;;  %467 = vst [vmem:[%s432_s10] sm:$0xff] %v466_v23 }
 0x137   : > { %v468_v24 = vld [vmem:[%s244_s29 + $0x8] sm:$0xff]  ;;  %473 = vst [vmem:[%s432_s10 + $0x48] sm:$0xff] %v472_v26 }
 0x138   : > { %469 = vst [vmem:[%s432_s10 + $0x18] sm:$0xff] %v468_v24 }
 0x139 PF: > { %s16_s17 = sadd.s32 1, %s780_s17   ;;  %s969_s12 = smov %s764_s13 }
 0x13a   : > { %p13_p11 = scmp.ge.s32.totalorder %s16_s17, 5   ;;  %s970_s13 = smov %s768_s14 }
 0x13b   : > { %s971_s14 = smov %s854_s24  ;;  %s972_s15 = smov %s776_s16 }
 0x13c   : > { %s973_s16 = smov %s975_s19  ;;  %15 = sbr.rel (!%p13_p11) target bundleno = 4 (0x4), region = 124 }
 0x143   :  { %489 = vsyncpa [#allocation4], 1 }
 0x144   :  { %491 = vsyncpa [#allocation4 + $0x1], 1 }

// kernel: block_forward.10
= control target key start
LH: loop header
LB: loop body
LE: loop exit
PB: predicated region body
PF: predicated region fallthrough
CT: control target
= control target key end

     0   :  { %s298_s1 = inlined_call_operand.vmem [shape: bf16[128,128], index: 1, kind: input, shape index: {}]   ;;  %s299_s0 = inlined_call_operand.vmem [shape: f32[32,128], index: 0, kind: input, shape index: {}]   ;;  %s300_s2 = inlined_call_operand.vmem [shape: f32[1,128], index: 2, kind: input, shape index: {}]   ;;  %s301_s3 = inlined_call_operand.vmem [shape: f32[32,128], index: 3, kind: output, shape index: {}]  }
   0x1   :  { %v219_v0 = vld [vmem:[%s298_s1] sm:$0xff]   ;;  %v220_v1 = vld [vmem:[%s298_s1 + $0x8] sm:$0xff]   ;;  %v221_v2 = vld [vmem:[%s298_s1 + $0x10] sm:$0xff]  }
   0x2   :  { %199 = vmatprep.subr.bf16.mxu0 %v219_v0  ;;  %v222_v3 = vld [vmem:[%s298_s1 + $0x18] sm:$0xff]   ;;  %v27_v4 = vld [vmem:[%s299_s0] sm:$0xff]  ;;  %v28_v5 = vld [vmem:[%s299_s0 + $0x8] sm:$0xff] }
   0x3   :  { %200 = vmatpush3.bf16.msra.mxu0 %v219_v0  ;;  %v31_v6 = vpack.c.bf16 %v28_v5, %v27_v4  ;;  %v223_v7 = vld [vmem:[%s298_s1 + $0x20] sm:$0xff]   ;;  %v224_v8 = vld [vmem:[%s298_s1 + $0x28] sm:$0xff]   ;;  %v225_v9 = vld [vmem:[%s298_s1 + $0x30] sm:$0xff]  }
   0x4   :  { %201 = vmatprep.subr.bf16.mxu0 %v220_v1  ;;  %v226_v10 = vld [vmem:[%s298_s1 + $0x38] sm:$0xff]   ;;  %v29_v11 = vld [vmem:[%s299_s0 + $0x10] sm:$0xff]  ;;  %v188_v14 = vld [vmem:[%s300_s2] ss:$0 sm:$0xff] }
   0x5   :  { %215 = vmatprep.mubr.bf16.mxu0 %v31_v6  ;;  %v30_v12 = vld [vmem:[%s299_s0 + $0x18] sm:$0xff] }
   0x6   :  { %v32_v13 = vpack.c.bf16 %v30_v12, %v29_v11 }
   0x7   :  { %202 = vmatpush3.bf16.msra.mxu0 %v220_v1 }
   0x8   :  { %203 = vmatprep.subr.bf16.mxu0 %v221_v2 }
   0xb   :  { %204 = vmatpush3.bf16.msra.mxu0 %v221_v2 }
   0xc   :  { %205 = vmatprep.subr.bf16.mxu0 %v222_v3 }
   0xf   :  { %206 = vmatpush3.bf16.msra.mxu0 %v222_v3 }
  0x10   :  { %207 = vmatprep.subr.bf16.mxu0 %v223_v7 }
  0x13   :  { %208 = vmatpush3.bf16.msra.mxu0 %v223_v7 }
  0x14   :  { %209 = vmatprep.subr.bf16.mxu0 %v224_v8 }
  0x17   :  { %210 = vmatpush3.bf16.msra.mxu0 %v224_v8 }
  0x18   :  { %211 = vmatprep.subr.bf16.mxu0 %v225_v9 }
  0x1b   :  { %212 = vmatpush3.bf16.msra.mxu0 %v225_v9 }
  0x1c   :  { %213 = vmatprep.subr.bf16.mxu0 %v226_v10 }
  0x1f   :  { %214 = vmatpush3.bf16.msra.mxu0 %v226_v10 }
  0x22   :  { %216 = vmatmul.mubr.bf16.vlgmr.msra.gmra.mrb[0].mxu0 %v32_v13 }
  0xf5   :  { %v217_v15 = vpop.f32.mrb[0].mxu0 }
  0xf6   :  { %v170_v16 = vadd.f32 %v217_v15, %v188_v14  ;;  %v131_v17 = vpop.f32.mrb[1].mxu0 }
  0xf7   :  { %v168_v18 = vadd.f32 %v188_v14, %v131_v17  ;;  %v218_v19 = vpop.f32.mrb[2].mxu0 }
  0xf8   :  { %174 = vst [vmem:[%s301_s3 + $0x10] sm:$0xff] %v170_v16  ;;  %v171_v20 = vadd.f32 %v218_v19, %v188_v14  ;;  %v134_v21 = vpop.f32.mrb[3].mxu0 }
  0xf9   :  { %172 = vst [vmem:[%s301_s3] sm:$0xff] %v168_v18  ;;  %v169_v22 = vadd.f32 %v188_v14, %v134_v21 }
  0xfa   :  { %175 = vst [vmem:[%s301_s3 + $0x18] sm:$0xff] %v171_v20 }
  0xfb   :  { %173 = vst [vmem:[%s301_s3 + $0x8] sm:$0xff] %v169_v22 }

// kernel: block_forward.9
= control target key start
LH: loop header
LB: loop body
LE: loop exit
PB: predicated region body
PF: predicated region fallthrough
CT: control target
= control target key end

     0   :  { %s1216_s12 = smov 0   ;;  %s1218_s13 = smov 0   ;;  %s1392_s0 = inlined_call_operand.vmem [shape: f32[2,16,384], index: 0, kind: input, shape index: {}, may-alias: {0,1,2}]   ;;  %s1393_s1 = inlined_call_operand.vmem [shape: f32[2,16,384], index: 1, kind: input, shape index: {}, may-alias: {0,1,2}]   ;;  %s1394_s2 = inlined_call_operand.vmem [shape: f32[2,16,384], index: 2, kind: input, shape index: {}, may-alias: {0,1,2}]   ;;  %s1395_s3 = inlined_call_operand.vmem [shape: f32[2,16,128], index: 3, kind: output, shape index: {}]  }
   0x1   :  { %s1220_s14 = smov 0  }
   0x2 LB: > { %s1008_s15 = sadd.s32 4294967295, %s1188_s14   ;;  %s1233_s16 = sadd.s32 1, %s1188_s14   ;;  %s1188_s14 = sphi %s1220_s14, %s1399_s14   ;;  %s1184_s13 = sphi %s1218_s13, %s1398_s13   ;;  %s1180_s12 = sphi %s1216_s12, %s1397_s12  }
   0x3   : > { %s17_s17 = ssub.s32 %s1188_s14, %s1233_s16  ;;  %s20_s18 = sadd.s32 1, %s1184_s13 }
   0x4   : > { %p18_p0 = scmp.eq.s32.totalorder %s17_s17, 0  ;;  %p27_p1 = scmp.ne.s32.totalorder %s1184_s13, %s1180_s12 }
   0x5   : > { %p28_p2 = scmp.eq.s32.totalorder %s1188_s14, 0  ;;  %p1011_p4 = scmp.ge.s32.totalorder %s1188_s14, 2 }
   0x6   : > { %s1242_s19 = scalar_select %p18_p0, %s1184_s13, %s20_s18  }
   0x7   : > { %p1244_p3 = por %p28_p2, %p27_p1  ;;  %131 = sbr.rel (%p1011_p4) target bundleno = 35 (0x23), region = 16 }
   0xe   : > { %134 = sbr.rel (!%p1244_p3) target bundleno = 21 (0x15), region = 20  ;;  %s136_s21 = sand.u32 (%p1244_p3), 1, %s1184_s13  }
   0xf   : > { %s1103_s22 = smul.u32 (%p1244_p3), 48, %s1188_s14  ;;  %s1012_s23 = sshll.u32 (%p1244_p3), %s136_s21, 4 }
  0x10   : > { %s138_s27 = scalar_lea.vmem (%p1244_p3), [#allocation2], %s1012_s23 }
  0x11   : > { %s141_s26 = scalar_lea.vmem (%p1244_p3), %s1392_s0, %s1103_s22 }
  0x12   : > { %v171_v0 = vld [vmem:[%s141_s26] sm:$0xff] (%p1244_p3)  ;;  %v173_v1 = vld [vmem:[%s141_s26 + $0x18] sm:$0xff] (%p1244_p3) }
  0x13   : > { %172 = vst [vmem:[%s138_s27] sm:$0xff] (%p1244_p3), %v171_v0  ;;  %174 = vst [vmem:[%s138_s27 + $0x8] sm:$0xff] (%p1244_p3), %v173_v1 }
  0x15 PF: > { %180 = sbr.rel (!%p1244_p3) target bundleno = 28 (0x1c), region = 58  ;;  %s182_s28 = sand.u32 (%p1244_p3), 1, %s1184_s13  }
  0x16   : > { %s1015_s29 = smul.u32 (%p1244_p3), 48, %s1188_s14  ;;  %s1014_s30 = sshll.u32 (%p1244_p3), %s182_s28, 4 }
  0x17   : > { %s184_s7 = scalar_lea.vmem (%p1244_p3), [#allocation3], %s1014_s30 }
  0x18   : > { %s936_s6 = scalar_lea.vmem (%p1244_p3), %s1393_s1, %s1015_s29 }
  0x19   : > { %v1016_v2 = vld [vmem:[%s936_s6 + $0x8] sm:$0xff] (%p1244_p3)  ;;  %v1017_v3 = vld [vmem:[%s936_s6 + $0x20] sm:$0xff] (%p1244_p3) }
  0x1a   : > { %219 = vst [vmem:[%s184_s7] sm:$0xff] (%p1244_p3), %v1016_v2  ;;  %221 = vst [vmem:[%s184_s7 + $0x8] sm:$0xff] (%p1244_p3), %v1017_v3 }
  0x1c PF: > { %227 = sbr.rel (!%p1244_p3) target bundleno = 35 (0x23), region = 96  ;;  %s229_s8 = sand.u32 (%p1244_p3), 1, %s1184_s13  }
  0x1d   : > { %s1019_s9 = smul.u32 (%p1244_p3), 48, %s1188_s14  ;;  %s1018_s10 = sshll.u32 (%p1244_p3), %s229_s8, 4 }
  0x1e   : > { %s231_s21 = scalar_lea.vmem (%p1244_p3), [#allocation4], %s1018_s10 }
  0x1f   : > { %s942_s18 = scalar_lea.vmem (%p1244_p3), %s1394_s2, %s1019_s9 }
  0x20   : > { %v1020_v4 = vld [vmem:[%s942_s18 + $0x10] sm:$0xff] (%p1244_p3)  ;;  %v1021_v5 = vld [vmem:[%s942_s18 + $0x28] sm:$0xff] (%p1244_p3) }
  0x21   : > { %266 = vst [vmem:[%s231_s21] sm:$0xff] (%p1244_p3), %v1020_v4  ;;  %268 = vst [vmem:[%s231_s21 + $0x8] sm:$0xff] (%p1244_p3), %v1021_v5 }
  0x23 PF: > { %p1022_p5 = scmp.ge.s32.totalorder %s1188_s14, 1  ;;  %p273_p6 = scmp.lt.s32.totalorder %s1188_s14, 3 }
  0x25   : > { %p274_p7 = pnand %p1022_p5, %p273_p6 }
  0x26   : > { %s280_s20 = sand.u32 (!%p274_p7), 1, %s1180_s12   ;;  %v1190_v6 = vmov (!%p274_p7), 0.0   ;;  %vm1191_vm0 = vmmov (!%p274_p7), 0   ;;  %vm351_vm1 = vcmask (!%p274_p7), 261120   ;;  %v331_v16 = vlaneseq (!%p274_p7)  ;;  %s1193_s24 = smov (!%p274_p7), 96  }
  0x27   : > { %277 = sbr.rel (%p274_p7) target bundleno = 1519 (0x5ef), region = 134  ;;  %1055 = vmatprep.subr.bf16.mxu0 (!%p274_p7), %v1190_v6  ;;  %s1274_s22 = sshll.u32 (!%p274_p7), %s280_s20, 4  ;;  %1057 = vmatprep.mubr.msk.bf16.mxu0 (!%p274_p7), %vm1191_vm0, %v1190_v6  ;;  %v1192_v20 = vmov (!%p274_p7), -inf   ;;  %vm399_vm4 = vcmask (!%p274_p7), 130048   ;;  %vm612_vm5 = vcmask (!%p274_p7), 523520   ;;  %vm758_vm6 = vcmask (!%p274_p7), 785920  }
  0x28   : > { %1061 = vmatprep.subr.bf16.mxu1 (!%p274_p7), %v1190_v6  ;;  %1063 = vmatprep.mubr.msk.bf16.mxu1 (!%p274_p7), %vm1191_vm0, %v1190_v6  ;;  %s289_s23 = scalar_lea.vmem (!%p274_p7), [#allocation3], %s1274_s22  ;;  %s282_s12 = scalar_lea.vmem (!%p274_p7), [#allocation2], %s1274_s22  ;;  %v332_v17 = vshrl.u32 (!%p274_p7), %v331_v16, 7  ;;  %v335_v18 = vand.u32 (!%p274_p7), 127, %v331_v16  ;;  %vm904_vm7 = vcmask (!%p274_p7), 1048320  }
  0x29   : > { %v345_v7 = vld [vmem:[%s289_s23] sm:$0xff] (!%p274_p7)  ;;  %v346_v8 = vld [vmem:[%s289_s23 + $0x8] sm:$0xff] (!%p274_p7)  ;;  %s1194_s25 = smov (!%p274_p7), 32   ;;  %s296_s26 = scalar_lea.vmem (!%p274_p7), [#allocation4], %s1274_s22 }
  0x2a   : > { %v340_v9 = vld [vmem:[%s282_s12] sm:$0xff] (!%p274_p7)  ;;  %v347_v10 = vpack.c.bf16 (!%p274_p7), %v346_v8, %v345_v7  ;;  %v341_v11 = vld [vmem:[%s282_s12 + $0x8] sm:$0xff] (!%p274_p7)  ;;  %v333_v19 = vadd.s32 (!%p274_p7), 8, %v332_v17  ;;  %vm336_vm2 = vcmp.ge.s32.totalorder (!%p274_p7), %v332_v17, %v335_v18  ;;  %s1195_s27 = smov (!%p274_p7), 64   ;;  %p325_p8 = scmp.lt.s32.totalorder (!%p274_p7), %s1008_s15, 1 }
  0x2b   : > { %v342_v13 = vmul.f32 (!%p274_p7), 0.17677669, %v340_v9  ;;  %v343_v14 = vmul.f32 (!%p274_p7), 0.17677669, %v341_v11  ;;  %v1288_v21 = vsel (!%p274_p7), %vm336_vm2, 0.0, %v1192_v20  ;;  %v348_v41 = vld [vmem:[%s296_s26] sm:$0xff] (!%p274_p7) }
  0x2c   : > { %v356_v12 = vsel (!%p274_p7), %vm351_vm1, %v347_v10, 0  ;;  %vm337_vm3 = vcmp.ge.s32.totalorder (!%p274_p7), %v333_v19, %v335_v18  ;;  %v349_v42 = vld [vmem:[%s296_s26 + $0x8] sm:$0xff] (!%p274_p7) }
  0x2d   : > { %1056 = vmatpush3.bf16.xpose.msra.mxu0 (!%p274_p7), %v356_v12  ;;  %v344_v15 = vpack.c.bf16 (!%p274_p7), %v343_v14, %v342_v13  ;;  %v1290_v23 = vsel (!%p274_p7), %vm337_vm3, 0.0, %v1192_v20  ;;  %v1301_v43 = vpack.c.bf16 (!%p274_p7), %v349_v42, %v348_v41 }
  0x2e   : > { %1073 = vmatprep.subr.bf16.mxu0 %v1190_v6  ;;  %s1401_s15 = smov (!%p325_p8, %s1008_s15), 1 }
  0x2f   : > { %1062 = vmatpush3.bf16.msra.mxu1 %v1301_v43  ;;  %s1038_s28 = sshll.u32 %s1401_s15, 4 }
  0x30   : > { %1067 = vmatprep.subr.bf16.mxu1 %v1190_v6  ;;  %s1331_s4 = scalar_lea.vmem %s1395_s3, %s1038_s28 }
  0x34   : > { %1058 = vmatmul.mubr.msk.bf16.vlgmr.msra.gmra.mrb[0].mxu0 %vm351_vm1, %v344_v15 }
  0x35   : > { %1075 = vmatprep.mubr.msk.bf16.mxu0 %vm1191_vm0, %v1190_v6 }
 0x107   : > { %v392_v22 = vpop.f32.mrb[0].mxu0 }
 0x108   : > { %v393_v24 = vadd.f32 %v392_v22, %v1288_v21  ;;  %v1059_v25 = vpop.f32.mrb[1].mxu0 }
 0x109   : > { %v395_v26 = vpop.f32.mrb[2].mxu0 }
 0x10a   : > { %v396_v27 = vadd.f32 %v395_v26, %v1290_v23  ;;  %v1060_v28 = vpop.f32.mrb[3].mxu0  ;;  %v400_v29 = vsel %vm399_vm4, %v393_v24, -inf }
 0x10b   : > { %401 = vmax.xlane.f32.xlu0 %v400_v29 }
 0x10c   : > { %v403_v30 = vsel %vm399_vm4, %v396_v27, -inf }
 0x10f   : > { %404 = vmax.xlane.f32.xlu0 %v403_v30 }
 0x125   : > { %484 = vrot.lane.b32.xlu0 %v347_v10, %s1193_s24 }
 0x129   : > { %776 = vrot.lane.b32.xlu0 %v347_v10, %s1194_s25 }
 0x198   : > { %v402_v31 = vpop.xlane.xlu0 %401 }
 0x199   : > { %v406_v32 = vsub.f32 %v393_v24, %v402_v31 }
 0x19b   : > { %v408_v33 = vmul.f32 1.442695, %v406_v32 }
 0x19c   : > { %v405_v34 = vpop.xlane.xlu0 %404 }
 0x19d   : > { %1134 = vpow2.f32 %v408_v33  ;;  %v407_v35 = vsub.f32 %v396_v27, %v405_v34 }
 0x19f   : > { %v410_v36 = vmul.f32 1.442695, %v407_v35 }
 0x1a0   : > { %v485_v48 = vpop.permute.xlu0 %484 }
 0x1a1   : > { %1136 = vpow2.f32 %v410_v36  ;;  %v490_v52 = vsel %vm351_vm1, %v485_v48, 0 }
 0x1a4   : > { %v777_v56 = vpop.permute.xlu0 %776 }
 0x1a5   : > { %v782_v58 = vsel %vm351_vm1, %v777_v56, 0 }
 0x1a7   : > { %v1135_v37 = vpop.eup %1134 }
 0x1a8   : > { %v412_v38 = vsel %vm399_vm4, %v1135_v37, 0.0 }
 0x1a9   : > { %413 = vadd.xlane.f32.xlu1 %v412_v38 }
 0x1ab   : > { %v1137_v39 = vpop.eup %1136 }
 0x1ac   : > { %v415_v40 = vsel %vm399_vm4, %v1137_v39, 0.0 }
 0x1ad   : > { %416 = vadd.xlane.f32.xlu1 %v415_v40 }
 0x1be   : > { %481 = vrot.lane.b32.xlu1 %v344_v15, %s1193_s24 }
 0x1c2   : > { %630 = vrot.lane.b32.xlu1 %v347_v10, %s1195_s27 }
 0x1c6   : > { %627 = vrot.lane.b32.xlu1 %v344_v15, %s1195_s27 }
 0x1ca   : > { %773 = vrot.lane.b32.xlu1 %v344_v15, %s1194_s25 }
 0x236   : > { %v414_v44 = vpop.xlane.xlu1 %413 }
 0x237   : > { %1138 = vrcp.f32 %v414_v44 }
 0x23a   : > { %v417_v45 = vpop.xlane.xlu1 %416 }
 0x23b   : > { %1140 = vrcp.f32 %v417_v45 }
 0x23e   : > { %v482_v51 = vpop.permute.xlu1 %481 }
 0x241   : > { %v1139_v46 = vpop.eup %1138 }
 0x242   : > { %v420_v49 = vmul.f32 %v1139_v46, %v1135_v37  ;;  %v631_v54 = vpop.permute.xlu1 %630 }
 0x243   : > { %v636_v55 = vsel %vm351_vm1, %v631_v54, 0 }
 0x245   : > { %v1141_v47 = vpop.eup %1140 }
 0x246   : > { %v421_v50 = vmul.f32 %v1141_v47, %v1137_v39  ;;  %v628_v57 = vpop.permute.xlu1 %627 }
 0x248   : > { %v422_v53 = vpack.c.bf16 %v421_v50, %v420_v49 }
 0x24a   : > { %1064 = vmatmul.mubr.msk.bf16.vlgmr.msra.gmra.mrb[0].mxu1 %vm399_vm4, %v422_v53  ;;  %v774_v59 = vpop.permute.xlu1 %773 }
 0x24b   : > { %1068 = vmatpush3.bf16.xpose.msra.mxu1 %v490_v52  ;;  %1069 = vmatprep.mubr.msk.bf16.mxu1 %vm1191_vm0, %v1190_v6 }
 0x24c   : > { %1079 = vmatprep.subr.bf16.mxu1 %v1190_v6 }
 0x252   : > { %1070 = vmatmul.mubr.msk.bf16.vlgmr.msra.gmra.mrb[4].mxu1 %vm351_vm1, %v482_v51 }
 0x253   : > { %1080 = vmatpush3.bf16.xpose.msra.mxu1 %v636_v55  ;;  %1081 = vmatprep.mubr.msk.bf16.mxu1 %vm1191_vm0, %v1190_v6 }
 0x254   : > { %1091 = vmatprep.subr.bf16.mxu1 %v1190_v6 }
 0x25a   : > { %1082 = vmatmul.mubr.msk.bf16.vlgmr.msra.gmra.mrb[8].mxu1 %vm351_vm1, %v628_v57 }
 0x25b   : > { %1092 = vmatpush3.bf16.xpose.msra.mxu1 %v782_v58  ;;  %1093 = vmatprep.mubr.msk.bf16.mxu1 %vm1191_vm0, %v1190_v6 }
 0x262   : > { %1094 = vmatmul.mubr.msk.bf16.vlgmr.msra.gmra.mrb[12].mxu1 %vm351_vm1, %v774_v59 }
 0x31d   : > { %v460_v60 = vpop.f32.mrb[0].mxu1 }
 0x31e   : > { %467 = vst.msk [vmem:[%s1331_s4] sm:$0xff] %vm351_vm1, %v460_v60  ;;  %v1065_v61 = vpop.f32.mrb[1].mxu1 }
 0x31f   : > { %v463_v62 = vpop.f32.mrb[2].mxu1 }
 0x320   : > { %468 = vst.msk [vmem:[%s1331_s4 + $0x8] sm:$0xff] %vm351_vm1, %v463_v62  ;;  %v1066_v63 = vpop.f32.mrb[3].mxu1 }
 0x325   : > { %v526_v0 = vpop.f32.mrb[4].mxu1 }
 0x326   : > { %v527_v1 = vadd.f32 %v526_v0, %v1288_v21  ;;  %v1071_v2 = vpop.f32.mrb[5].mxu1 }
 0x327   : > { %v529_v3 = vpop.f32.mrb[6].mxu1 }
 0x328   : > { %v530_v4 = vadd.f32 %v529_v3, %v1290_v23  ;;  %v1072_v5 = vpop.f32.mrb[7].mxu1  ;;  %v533_v7 = vsel %vm399_vm4, %v527_v1, -inf }
 0x329   : > { %534 = vmax.xlane.f32.xlu0 %v533_v7 }
 0x32a   : > { %v536_v8 = vsel %vm399_vm4, %v530_v4, -inf }
 0x32b   : > { %537 = vmax.xlane.f32.xlu1 %v536_v8 }
 0x32d   : > { %v672_v9 = vpop.f32.mrb[8].mxu1 }
 0x32e   : > { %v673_v10 = vadd.f32 %v672_v9, %v1288_v21  ;;  %v1083_v11 = vpop.f32.mrb[9].mxu1 }
 0x32f   : > { %v675_v12 = vpop.f32.mrb[10].mxu1 }
 0x330   : > { %v676_v13 = vadd.f32 %v675_v12, %v1290_v23  ;;  %v1084_v14 = vpop.f32.mrb[11].mxu1  ;;  %v679_v15 = vsel %vm399_vm4, %v673_v10, -inf }
 0x331   : > { %680 = vmax.xlane.f32.xlu0 %v679_v15 }
 0x332   : > { %v682_v16 = vsel %vm399_vm4, %v676_v13, -inf }
 0x335   : > { %683 = vmax.xlane.f32.xlu0 %v682_v16  ;;  %v818_v17 = vpop.f32.mrb[12].mxu1 }
 0x336   : > { %v819_v18 = vadd.f32 %v818_v17, %v1288_v21  ;;  %v1095_v19 = vpop.f32.mrb[13].mxu1 }
 0x337   : > { %v821_v20 = vpop.f32.mrb[14].mxu1 }
 0x338   : > { %v822_v22 = vadd.f32 %v821_v20, %v1290_v23  ;;  %v825_v24 = vsel %vm399_vm4, %v819_v18, -inf  ;;  %v1096_v25 = vpop.f32.mrb[15].mxu1 }
 0x339   : > { %826 = vmax.xlane.f32.xlu0 %v825_v24 }
 0x33a   : > { %v828_v26 = vsel %vm399_vm4, %v822_v22, -inf }
 0x33b   : > { %829 = vmax.xlane.f32.xlu1 %v828_v26 }
 0x3b6   : > { %v535_v27 = vpop.xlane.xlu0 %534 }
 0x3b7   : > { %v539_v28 = vsub.f32 %v527_v1, %v535_v27 }
 0x3b8   : > { %v538_v29 = vpop.xlane.xlu1 %537 }
 0x3b9   : > { %v541_v30 = vmul.f32 1.442695, %v539_v28  ;;  %v540_v31 = vsub.f32 %v530_v4, %v538_v29 }
 0x3bb   : > { %1142 = vpow2.f32 %v541_v30  ;;  %v543_v32 = vmul.f32 1.442695, %v540_v31 }
 0x3bd   : > { %1144 = vpow2.f32 %v543_v32 }
 0x3be   : > { %v681_v21 = vpop.xlane.xlu0 %680 }
 0x3bf   : > { %v685_v33 = vsub.f32 %v673_v10, %v681_v21 }
 0x3c1   : > { %v687_v34 = vmul.f32 1.442695, %v685_v33 }
 0x3c2   : > { %v684_v35 = vpop.xlane.xlu0 %683 }
 0x3c3   : > { %1146 = vpow2.f32 %v687_v34  ;;  %v686_v23 = vsub.f32 %v676_v13, %v684_v35 }
 0x3c5   : > { %v1143_v36 = vpop.eup %1142  ;;  %v689_v37 = vmul.f32 1.442695, %v686_v23 }
 0x3c6   : > { %v827_v38 = vpop.xlane.xlu0 %826  ;;  %v545_v39 = vsel %vm399_vm4, %v1143_v36, 0.0 }
 0x3c7   : > { %v1145_v40 = vpop.eup %1144  ;;  %1148 = vpow2.f32 %v689_v37  ;;  %v831_v41 = vsub.f32 %v819_v18, %v827_v38  ;;  %546 = vadd.xlane.f32.xlu0 %v545_v39 }
 0x3c8   : > { %v548_v42 = vsel %vm399_vm4, %v1145_v40, 0.0  ;;  %v830_v51 = vpop.xlane.xlu1 %829 }
 0x3c9   : > { %v833_v44 = vmul.f32 1.442695, %v831_v41  ;;  %549 = vadd.xlane.f32.xlu1 %v548_v42  ;;  %v832_v52 = vsub.f32 %v822_v22, %v830_v51 }
 0x3cb   : > { %1150 = vpow2.f32 %v833_v44  ;;  %v835_v53 = vmul.f32 1.442695, %v832_v52 }
 0x3cd   : > { %v1147_v45 = vpop.eup %1146  ;;  %1152 = vpow2.f32 %v835_v53 }
 0x3ce   : > { %v691_v46 = vsel %vm399_vm4, %v1147_v45, 0.0 }
 0x3cf   : > { %692 = vadd.xlane.f32.xlu0 %v691_v46 }
 0x3d1   : > { %v1149_v47 = vpop.eup %1148 }
 0x3d2   : > { %v694_v48 = vsel %vm399_vm4, %v1149_v47, 0.0 }
 0x3d3   : > { %695 = vadd.xlane.f32.xlu1 %v694_v48 }
 0x3d5   : > { %v1151_v49 = vpop.eup %1150 }
 0x3d6   : > { %v837_v50 = vsel %vm399_vm4, %v1151_v49, 0.0 }
 0x3d7   : > { %838 = vadd.xlane.f32.xlu0 %v837_v50  ;;  %v1153_v54 = vpop.eup %1152 }
 0x3d8   : > { %v840_v55 = vsel %vm399_vm4, %v1153_v54, 0.0 }
 0x3e4   : > { %703 = vrot.lane.b32.xlu1 %v1301_v43, %s1195_s27 }
 0x3ed   : > { %557 = vrot.lane.b32.xlu0 %v1301_v43, %s1193_s24 }
 0x408   : > { %841 = vadd.xlane.f32.xlu1 %v840_v55 }
 0x419   : > { %849 = vrot.lane.b32.xlu1 %v1301_v43, %s1194_s25 }
 0x454   : > { %v547_v57 = vpop.xlane.xlu0 %546 }
 0x456   : > { %v550_v56 = vpop.xlane.xlu1 %549 }
 0x457   : > { %1154 = vrcp.f32 %v550_v56 }
 0x458   : > { %1156 = vrcp.f32 %v547_v57 }
 0x45c   : > { %v693_v58 = vpop.xlane.xlu0 %692 }
 0x460   : > { %v696_v59 = vpop.xlane.xlu1 %695 }
 0x461   : > { %1158 = vrcp.f32 %v696_v59  ;;  %v1155_v60 = vpop.eup %1154 }
 0x462   : > { %1160 = vrcp.f32 %v693_v58  ;;  %v1157_v62 = vpop.eup %1156  ;;  %v554_v63 = vmul.f32 %v1155_v60, %v1145_v40 }
 0x463   : > { %v553_v0 = vmul.f32 %v1157_v62, %v1143_v36 }
 0x464   : > { %v839_v61 = vpop.xlane.xlu0 %838  ;;  %v704_v43 = vpop.permute.xlu1 %703 }
 0x465   : > { %v555_v2 = vpack.c.bf16 %v554_v63, %v553_v0  ;;  %1162 = vrcp.f32 %v839_v61 }
 0x468   : > { %v558_v1 = vpop.permute.xlu0 %557 }
 0x469   : > { %1074 = vmatpush3.bf16.msra.mxu0 %v558_v1 }
 0x46a   : > { %1085 = vmatprep.subr.bf16.mxu0 %v1190_v6 }
 0x46b   : > { %v1159_v3 = vpop.eup %1158 }
 0x46c   : > { %1076 = vmatmul.mubr.msk.bf16.vlgmr.msra.gmra.mrb[4].mxu0 %vm399_vm4, %v555_v2  ;;  %v1161_v4 = vpop.eup %1160  ;;  %v700_v5 = vmul.f32 %v1159_v3, %v1149_v47 }
 0x46d   : > { %1086 = vmatpush3.bf16.msra.mxu0 %v704_v43  ;;  %1087 = vmatprep.mubr.msk.bf16.mxu0 %vm1191_vm0, %v1190_v6  ;;  %v699_v7 = vmul.f32 %v1161_v4, %v1147_v45 }
 0x46e   : > { %1097 = vmatprep.subr.bf16.mxu0 %v1190_v6 }
 0x46f   : > { %v701_v8 = vpack.c.bf16 %v700_v5, %v699_v7  ;;  %v1163_v11 = vpop.eup %1162 }
 0x470   : > { %v845_v13 = vmul.f32 %v1163_v11, %v1151_v49 }
 0x474   : > { %1088 = vmatmul.mubr.msk.bf16.vlgmr.msra.gmra.mrb[8].mxu0 %vm399_vm4, %v701_v8 }
 0x475   : > { %1099 = vmatprep.mubr.msk.bf16.mxu0 %vm1191_vm0, %v1190_v6 }
 0x495   : > { %v842_v9 = vpop.xlane.xlu1 %841 }
 0x496   : > { %1164 = vrcp.f32 %v842_v9 }
 0x499   : > { %v850_v10 = vpop.permute.xlu1 %849 }
 0x49a   : > { %1098 = vmatpush3.bf16.msra.mxu0 %v850_v10 }
 0x4a0   : > { %v1165_v12 = vpop.eup %1164 }
 0x4a1   : > { %v846_v14 = vmul.f32 %v1165_v12, %v1153_v54 }
 0x4a3   : > { %v847_v15 = vpack.c.bf16 %v846_v14, %v845_v13 }
 0x4a5   : > { %1100 = vmatmul.mubr.msk.bf16.vlgmr.msra.gmra.mrb[12].mxu0 %vm399_vm4, %v847_v15 }
 0x53f   : > { %v597_v16 = vpop.f32.mrb[4].mxu0 }
 0x540   : > { %606 = vrot.lane.b32.xlu1 %v597_v16, %s1194_s25  ;;  %v1077_v17 = vpop.f32.mrb[5].mxu0 }
 0x541   : > { %v600_v18 = vpop.f32.mrb[6].mxu0 }
 0x542   : > { %608 = vrot.lane.b32.xlu0 %v600_v18, %s1194_s25  ;;  %v1078_v6 = vpop.f32.mrb[7].mxu0 }
 0x547   : > { %v743_v19 = vpop.f32.mrb[8].mxu0 }
 0x548   : > { %752 = vrot.lane.b32.xlu1 %v743_v19, %s1195_s27  ;;  %v1089_v20 = vpop.f32.mrb[9].mxu0 }
 0x549   : > { %v746_v22 = vpop.f32.mrb[10].mxu0 }
 0x54a   : > { %754 = vrot.lane.b32.xlu0 %v746_v22, %s1195_s27  ;;  %v1090_v24 = vpop.f32.mrb[11].mxu0 }
 0x578   : > { %v889_v25 = vpop.f32.mrb[12].mxu0 }
 0x579   : > { %898 = vrot.lane.b32.xlu1 %v889_v25, %s1193_s24  ;;  %v1101_v26 = vpop.f32.mrb[13].mxu0 }
 0x57a   : > { %v892_v27 = vpop.f32.mrb[14].mxu0 }
 0x57b   : > { %900 = vrot.lane.b32.xlu0 %v892_v27, %s1193_s24  ;;  %v1102_v28 = vpop.f32.mrb[15].mxu0 }
 0x5b2   : > { %v607_v29 = vpop.permute.xlu1 %606 }
 0x5b3   : > { %613 = vst.msk [vmem:[%s1331_s4] sm:$0xff] %vm612_vm5, %v607_v29 }
 0x5b4   : > { %v609_v30 = vpop.permute.xlu0 %608 }
 0x5b5   : > { %614 = vst.msk [vmem:[%s1331_s4 + $0x8] sm:$0xff] %vm612_vm5, %v609_v30 }
 0x5ba   : > { %v753_v31 = vpop.permute.xlu1 %752 }
 0x5bb   : > { %759 = vst.msk [vmem:[%s1331_s4] sm:$0xff] %vm758_vm6, %v753_v31 }
 0x5bc   : > { %v755_v32 = vpop.permute.xlu0 %754 }
 0x5bd   : > { %760 = vst.msk [vmem:[%s1331_s4 + $0x8] sm:$0xff] %vm758_vm6, %v755_v32 }
 0x5eb   : > { %v899_v21 = vpop.permute.xlu1 %898 }
 0x5ec   : > { %905 = vst.msk [vmem:[%s1331_s4] sm:$0xff] %vm904_vm7, %v899_v21 }
 0x5ed   : > { %v901_v33 = vpop.permute.xlu0 %900 }
 0x5ee   : > { %906 = vst.msk [vmem:[%s1331_s4 + $0x8] sm:$0xff] %vm904_vm7, %v901_v33 }
 0x5ef PF: > { %p10_p9 = scmp.ge.s32.totalorder %s1233_s16, 4   ;;  %s1397_s12 = smov %s1184_s13 }
 0x5f0   : > { %s1398_s13 = smov %s1242_s19  ;;  %s1399_s14 = smov %s1233_s16 }
 0x5f1   :  { %12 = sbr.rel (!%p10_p9) target bundleno = 2 (0x2), region = 197 }

// kernel: block_forward.12
= control target key start
LH: loop header
LB: loop body
LE: loop exit
PB: predicated region body
PF: predicated region fallthrough
CT: control target
= control target key end

     0   :  { %s983_s12 = smov 0   ;;  %s985_s13 = smov 0   ;;  %s1161_s0 = inlined_call_operand.vmem [shape: f32[32,128], index: 0, kind: input, shape index: {}]   ;;  %s1162_s1 = inlined_call_operand.vmem [shape: bf16[128,512], index: 1, kind: input, shape index: {}]   ;;  %s1163_s2 = inlined_call_operand.vmem [shape: f32[1,512], index: 2, kind: input, shape index: {}]   ;;  %s1164_s3 = inlined_call_operand.vmem [shape: f32[32,512], index: 3, kind: output, shape index: {}]  }
   0x1   :  { %s987_s14 = smov 0   ;;  %s989_s15 = smov 0  }
   0x2   :  { %s991_s16 = smov 0  }
   0x3 LB: > { %s28_s17 = sadd.s32 1, %s956_s15  ;;  %s774_s18 = sadd.s32 4294967295, %s960_s16   ;;  %s960_s16 = sphi %s991_s16, %s13_s16   ;;  %s956_s15 = sphi %s989_s15, %s1169_s15   ;;  %s952_s14 = sphi %s987_s14, %s1168_s14   ;;  %s948_s13 = sphi %s985_s13, %s1167_s13   ;;  %s944_s12 = sphi %s983_s12, %s1166_s12  }
   0x4   : > { %p30_p0 = scmp.ge.s32.totalorder %s28_s17, 2  ;;  %p76_p1 = scmp.ne.s32.totalorder %s948_s13, %s944_s12 }
   0x5   : > { %p77_p2 = scmp.eq.s32.totalorder %s960_s16, 0  ;;  %p134_p4 = scmp.eq.s32.totalorder %s774_s18, 1 }
   0x6   : > { %s1171_s17 = smov (%p30_p0, %s28_s17), 0  ;;  %s69_s20 = sadd.s32 1, %s948_s13 }
   0x7   : > { %p78_p3 = por %p77_p2, %p76_p1  ;;  %s65_s19 = ssub.s32 %s956_s15, %s1171_s17 }
   0x8   : > { %p67_p5 = scmp.eq.s32.totalorder %s65_s19, 0  ;;  %p1018_p6 = por %p134_p4, %p76_p1 }
   0x9   : > { %p778_p7 = scmp.ge.s32.totalorder %s960_s16, 2 }
   0xa   : > { %s1023_s22 = scalar_select %p67_p5, %s948_s13, %s69_s20  }
   0xb   : > { %168 = sbr.rel (%p778_p7) target bundleno = 30 (0x1e), region = 20 }
  0x12   : > { %171 = sbr.rel (!%p78_p3) target bundleno = 30 (0x1e), region = 24  ;;  %s173_s23 = sand.u32 (%p78_p3), 1, %s948_s13  }
  0x13   : > { %s807_s24 = sshll.u32 (%p78_p3), %s956_s15, 3  ;;  %s779_s25 = sshll.u32 (%p78_p3), %s173_s23, 7 }
  0x14   : > { %s1031_s28 = scalar_lea.vmem (%p78_p3), %s1162_s1, %s807_s24  ;;  %s175_s29 = scalar_lea.vmem (%p78_p3), [#allocation3], %s779_s25 }
  0x15   : > { %v239_v0 = vld [vmem:[%s1031_s28] sm:$0xff] (%p78_p3)  ;;  %v241_v1 = vld [vmem:[%s1031_s28 + $0x10] sm:$0xff] (%p78_p3) }
  0x16   : > { %v243_v2 = vld [vmem:[%s1031_s28 + $0x20] sm:$0xff] (%p78_p3)  ;;  %240 = vst [vmem:[%s175_s29] sm:$0xff] (%p78_p3), %v239_v0  ;;  %242 = vst [vmem:[%s175_s29 + $0x8] sm:$0xff] (%p78_p3), %v241_v1  ;;  %v245_v3 = vld [vmem:[%s1031_s28 + $0x30] sm:$0xff] (%p78_p3) }
  0x17   : > { %244 = vst [vmem:[%s175_s29 + $0x10] sm:$0xff] (%p78_p3), %v243_v2  ;;  %v247_v4 = vld [vmem:[%s1031_s28 + $0x40] sm:$0xff] (%p78_p3)  ;;  %v249_v5 = vld [vmem:[%s1031_s28 + $0x50] sm:$0xff] (%p78_p3)  ;;  %246 = vst [vmem:[%s175_s29 + $0x18] sm:$0xff] (%p78_p3), %v245_v3 }
  0x18   : > { %248 = vst [vmem:[%s175_s29 + $0x20] sm:$0xff] (%p78_p3), %v247_v4  ;;  %250 = vst [vmem:[%s175_s29 + $0x28] sm:$0xff] (%p78_p3), %v249_v5  ;;  %v251_v6 = vld [vmem:[%s1031_s28 + $0x60] sm:$0xff] (%p78_p3)  ;;  %v253_v7 = vld [vmem:[%s1031_s28 + $0x70] sm:$0xff] (%p78_p3) }
  0x19   : > { %v255_v8 = vld [vmem:[%s1031_s28 + $0x80] sm:$0xff]  ;;  %252 = vst [vmem:[%s175_s29 + $0x30] sm:$0xff] %v251_v6  ;;  %254 = vst [vmem:[%s175_s29 + $0x38] sm:$0xff] %v253_v7  ;;  %v257_v9 = vld [vmem:[%s1031_s28 + $0x90] sm:$0xff] }
  0x1a   : > { %256 = vst [vmem:[%s175_s29 + $0x40] sm:$0xff] %v255_v8  ;;  %v259_v10 = vld [vmem:[%s1031_s28 + $0xa0] sm:$0xff]  ;;  %v261_v11 = vld [vmem:[%s1031_s28 + $0xb0] sm:$0xff]  ;;  %258 = vst [vmem:[%s175_s29 + $0x48] sm:$0xff] %v257_v9 }
  0x1b   : > { %260 = vst [vmem:[%s175_s29 + $0x50] sm:$0xff] %v259_v10  ;;  %262 = vst [vmem:[%s175_s29 + $0x58] sm:$0xff] %v261_v11  ;;  %v263_v12 = vld [vmem:[%s1031_s28 + $0xc0] sm:$0xff]  ;;  %v265_v13 = vld [vmem:[%s1031_s28 + $0xd0] sm:$0xff] }
  0x1c   : > { %v267_v14 = vld [vmem:[%s1031_s28 + $0xe0] sm:$0xff]  ;;  %264 = vst [vmem:[%s175_s29 + $0x60] sm:$0xff] %v263_v12  ;;  %266 = vst [vmem:[%s175_s29 + $0x68] sm:$0xff] %v265_v13  ;;  %v269_v15 = vld [vmem:[%s1031_s28 + $0xf0] sm:$0xff] }
  0x1d   : > { %268 = vst [vmem:[%s175_s29 + $0x70] sm:$0xff] %v267_v14  ;;  %270 = vst [vmem:[%s175_s29 + $0x78] sm:$0xff] %v269_v15 }
  0x1e PF: > { %p782_p8 = scmp.ge.s32.totalorder %s960_s16, 1  ;;  %p283_p9 = scmp.lt.s32.totalorder %s960_s16, 3 }
  0x20   : > { %p284_p10 = pnand %p782_p8, %p283_p9 }
  0x21   : > { %s290_s30 = sand.u32 (!%p284_p10), 1, %s944_s12   ;;  %v962_v16 = vmov (!%p284_p10), 0   ;;  %v363_v32 = vld [vmem:[%s1161_s0] sm:$0xff] (!%p284_p10)  ;;  %v364_v33 = vld [vmem:[%s1161_s0 + $0x8] sm:$0xff] (!%p284_p10)  ;;  %v365_v35 = vld [vmem:[%s1161_s0 + $0x10] sm:$0xff] (!%p284_p10)  ;;  %s785_s20 = sshll.u32 (!%p284_p10), %s952_s14, 1  ;;  %v547_v39 = vlaneseq (!%p284_p10) }
  0x22   : > { %287 = sbr.rel (%p284_p10) target bundleno = 329 (0x149), region = 66  ;;  %s783_s4 = sshll.u32 (!%p284_p10), %s290_s30, 7  ;;  %497 = vmatprep.mubr.bf16.mxu0 (!%p284_p10), %v962_v16  ;;  %507 = vmatprep.mubr.bf16.mxu1 (!%p284_p10), %v962_v16  ;;  %v366_v36 = vld [vmem:[%s1161_s0 + $0x18] sm:$0xff] (!%p284_p10)  ;;  %v367_v37 = vpack.c.bf16 (!%p284_p10), %v364_v33, %v363_v32 }
  0x23   : > { %s1054_s5 = scalar_lea.vmem (!%p284_p10), [#allocation3], %s783_s4  ;;  %v368_v38 = vpack.c.bf16 (!%p284_p10), %v366_v36, %v365_v35  ;;  %p336_p11 = scmp.lt.s32.totalorder (!%p284_p10), %s785_s20, 3  ;;  %v548_v40 = vshrl.u32 (!%p284_p10), %v547_v39, 7 }
  0x24   : > { %v866_v17 = vld [vmem:[%s1054_s5 + $0x4] ss:$8 sps:$4 sm:$0xff] (!%p284_p10)   ;;  %v868_v18 = vld [vmem:[%s1054_s5] ss:$8 sps:$4 sm:$0xff] (!%p284_p10)   ;;  %v869_v19 = vld [vmem:[%s1054_s5 + $0x14] ss:$8 sps:$4 sm:$0xff] (!%p284_p10)  }
  0x25   : > { %465 = vmatprep.subr.bf16.mxu0 (!%p284_p10), %v866_v17  ;;  %809 = vmatprep.subr.bf16.mxu1 (!%p284_p10), %v866_v17  ;;  %v871_v20 = vld [vmem:[%s1054_s5 + $0x10] ss:$8 sps:$4 sm:$0xff] (!%p284_p10)   ;;  %v872_v21 = vld [vmem:[%s1054_s5 + $0x24] ss:$8 sps:$4 sm:$0xff] (!%p284_p10)   ;;  %v874_v22 = vld [vmem:[%s1054_s5 + $0x20] ss:$8 sps:$4 sm:$0xff] (!%p284_p10)  }
  0x26   : > { %466 = vmatpush1.bf16.msra.mxu0 (!%p284_p10), %v868_v18  ;;  %817 = vmatpush1.bf16.msra.mxu1 (!%p284_p10), %v868_v18  ;;  %v875_v23 = vld [vmem:[%s1054_s5 + $0x34] ss:$8 sps:$4 sm:$0xff] (!%p284_p10)   ;;  %v877_v24 = vld [vmem:[%s1054_s5 + $0x30] ss:$8 sps:$4 sm:$0xff] (!%p284_p10)   ;;  %v878_v25 = vld [vmem:[%s1054_s5 + $0x44] ss:$8 sps:$4 sm:$0xff] (!%p284_p10)  }
  0x27   : > { %467 = vmatprep.subr.bf16.mxu0 (!%p284_p10), %v869_v19  ;;  %810 = vmatprep.subr.bf16.mxu1 (!%p284_p10), %v869_v19  ;;  %v880_v26 = vld [vmem:[%s1054_s5 + $0x40] ss:$8 sps:$4 sm:$0xff] (!%p284_p10)   ;;  %v881_v27 = vld [vmem:[%s1054_s5 + $0x54] ss:$8 sps:$4 sm:$0xff] (!%p284_p10)   ;;  %v883_v28 = vld [vmem:[%s1054_s5 + $0x50] ss:$8 sps:$4 sm:$0xff] (!%p284_p10)  }
  0x28   : > { %v884_v29 = vld [vmem:[%s1054_s5 + $0x64] ss:$8 sps:$4 sm:$0xff] (!%p284_p10)   ;;  %v886_v30 = vld [vmem:[%s1054_s5 + $0x60] ss:$8 sps:$4 sm:$0xff] (!%p284_p10)   ;;  %v887_v31 = vld [vmem:[%s1054_s5 + $0x74] ss:$8 sps:$4 sm:$0xff] (!%p284_p10)  }
  0x29   : > { %v889_v34 = vld [vmem:[%s1054_s5 + $0x70] ss:$8 sps:$4 sm:$0xff]   ;;  %s1173_s20 = smov (!%p336_p11, %s785_s20), 3  ;;  %v549_v41 = vsub.s32 0, %v548_v40  ;;  %v553_v43 = vsub.s32 1, %v548_v40  ;;  %s784_s26 = sshll.u32 %s290_s30, 6 }
  0x2a   : > { %468 = vmatpush1.bf16.msra.mxu0 %v871_v20  ;;  %818 = vmatpush1.bf16.msra.mxu1 %v871_v20  ;;  %s338_s25 = scalar_lea.vmem %s1163_s2, %s1173_s20  ;;  %s1116_s27 = scalar_lea.vmem [#allocation4], %s784_s26 }
  0x2b   : > { %469 = vmatprep.subr.bf16.mxu0 %v872_v21  ;;  %811 = vmatprep.subr.bf16.mxu1 %v872_v21  ;;  %v545_v42 = vld [vmem:[%s338_s25] sm:$0x3]  ;;  %s808_s12 = sshll.u32 (%p1018_p6), %s952_s14, 4 }
  0x2c   : > { %v550_v44 = vrot.slane %v545_v42, %v549_v41  ;;  %v554_v45 = vrot.slane %v545_v42, %v553_v43  ;;  %s641_s30 = scalar_lea.vmem (%p1018_p6), %s1164_s3, %s808_s12 }
  0x2e   : > { %470 = vmatpush1.bf16.msra.mxu0 %v874_v22  ;;  %819 = vmatpush1.bf16.msra.mxu1 %v874_v22 }
  0x2f   : > { %471 = vmatprep.subr.bf16.mxu0 %v875_v23  ;;  %812 = vmatprep.subr.bf16.mxu1 %v875_v23 }
  0x32   : > { %472 = vmatpush1.bf16.msra.mxu0 %v877_v24  ;;  %820 = vmatpush1.bf16.msra.mxu1 %v877_v24 }
  0x33   : > { %473 = vmatprep.subr.bf16.mxu0 %v878_v25  ;;  %813 = vmatprep.subr.bf16.mxu1 %v878_v25 }
  0x36   : > { %474 = vmatpush1.bf16.msra.mxu0 %v880_v26  ;;  %821 = vmatpush1.bf16.msra.mxu1 %v880_v26 }
  0x37   : > { %475 = vmatprep.subr.bf16.mxu0 %v881_v27  ;;  %814 = vmatprep.subr.bf16.mxu1 %v881_v27 }
  0x3a   : > { %476 = vmatpush1.bf16.msra.mxu0 %v883_v28  ;;  %822 = vmatpush1.bf16.msra.mxu1 %v883_v28 }
  0x3b   : > { %477 = vmatprep.subr.bf16.mxu0 %v884_v29  ;;  %815 = vmatprep.subr.bf16.mxu1 %v884_v29 }
  0x3e   : > { %478 = vmatpush1.bf16.msra.mxu0 %v886_v30  ;;  %823 = vmatpush1.bf16.msra.mxu1 %v886_v30 }
  0x3f   : > { %479 = vmatprep.subr.bf16.mxu0 %v887_v31  ;;  %816 = vmatprep.subr.bf16.mxu1 %v887_v31 }
  0x42   : > { %480 = vmatpush1.bf16.msra.mxu0 %v889_v34  ;;  %824 = vmatpush1.bf16.msra.mxu1 %v889_v34 }
  0x45   : > { %498 = vmatmul.mubr.bf16.vlgmr.msra.gmra.mrb[0].mxu0 %v367_v37  ;;  %508 = vmatmul.mubr.bf16.vlgmr.msra.gmra.mrb[0].mxu1 %v368_v38 }
 0x118   : > { %v499_v46 = vpop.f32.mrb[0].mxu0  ;;  %v509_v47 = vpop.f32.mrb[0].mxu1 }
 0x119   : > { %v1088_v48 = vadd.f32 %v550_v44, %v499_v46  ;;  %v1090_v49 = vadd.f32 %v550_v44, %v509_v47  ;;  %v501_v50 = vpop.f32.mrb[1].mxu0  ;;  %v511_v51 = vpop.f32.mrb[1].mxu1 }
 0x11a   : > { %v1092_v52 = vadd.f32 %v554_v45, %v501_v50  ;;  %v1094_v53 = vadd.f32 %v554_v45, %v511_v51  ;;  %v503_v54 = vpop.f32.mrb[2].mxu0  ;;  %v513_v55 = vpop.f32.mrb[2].mxu1 }
 0x11b   : > { %v565_v56 = vsub.f32 0.0, %v1088_v48  ;;  %v569_v57 = vsub.f32 0.0, %v1090_v49  ;;  %v1098_v58 = vadd.f32 %v550_v44, %v503_v54  ;;  %v1100_v59 = vadd.f32 %v550_v44, %v513_v55  ;;  %v505_v60 = vpop.f32.mrb[3].mxu0  ;;  %v515_v61 = vpop.f32.mrb[3].mxu1 }
 0x11c   : > { %v566_v62 = vsub.f32 0.0, %v1092_v52  ;;  %v570_v63 = vsub.f32 0.0, %v1094_v53  ;;  %v1104_v0 = vadd.f32 %v554_v45, %v505_v60  ;;  %v1106_v1 = vadd.f32 %v554_v45, %v515_v61 }
 0x11d   : > { %v573_v2 = vmul.f32 1.442695, %v565_v56  ;;  %v581_v3 = vmul.f32 1.442695, %v569_v57  ;;  %v567_v4 = vsub.f32 0.0, %v1098_v58  ;;  %v571_v5 = vsub.f32 0.0, %v1100_v59 }
 0x11e   : > { %v575_v6 = vmul.f32 1.442695, %v566_v62  ;;  %v583_v7 = vmul.f32 1.442695, %v570_v63  ;;  %v568_v8 = vsub.f32 0.0, %v1104_v0  ;;  %v572_v9 = vsub.f32 0.0, %v1106_v1 }
 0x11f   : > { %890 = vpow2.f32 %v573_v2  ;;  %v577_v10 = vmul.f32 1.442695, %v567_v4  ;;  %v585_v11 = vmul.f32 1.442695, %v571_v5 }
 0x120   : > { %892 = vpow2.f32 %v581_v3  ;;  %v579_v12 = vmul.f32 1.442695, %v568_v8  ;;  %v587_v13 = vmul.f32 1.442695, %v572_v9 }
 0x121   : > { %894 = vpow2.f32 %v575_v6 }
 0x122   : > { %896 = vpow2.f32 %v583_v7 }
 0x123   : > { %898 = vpow2.f32 %v577_v10 }
 0x124   : > { %900 = vpow2.f32 %v585_v11 }
 0x125   : > { %902 = vpow2.f32 %v579_v12 }
 0x126   : > { %904 = vpow2.f32 %v587_v13 }
 0x129   : > { %v891_v14 = vpop.eup %890 }
 0x12a   : > { %v893_v15 = vpop.eup %892  ;;  %v589_v16 = vadd.f32 1.0, %v891_v14 }
 0x12b   : > { %v895_v17 = vpop.eup %894  ;;  %v593_v18 = vadd.f32 1.0, %v893_v15 }
 0x12c   : > { %v897_v19 = vpop.eup %896  ;;  %906 = vrcp.f32 %v589_v16  ;;  %v590_v20 = vadd.f32 1.0, %v895_v17 }
 0x12d   : > { %v899_v21 = vpop.eup %898  ;;  %908 = vrcp.f32 %v593_v18  ;;  %v594_v22 = vadd.f32 1.0, %v897_v19 }
 0x12e   : > { %v901_v23 = vpop.eup %900  ;;  %910 = vrcp.f32 %v590_v20  ;;  %v591_v24 = vadd.f32 1.0, %v899_v21 }
 0x12f   : > { %v903_v25 = vpop.eup %902  ;;  %912 = vrcp.f32 %v594_v22  ;;  %v595_v26 = vadd.f32 1.0, %v901_v23 }
 0x130   : > { %v905_v27 = vpop.eup %904  ;;  %914 = vrcp.f32 %v591_v24  ;;  %v592_v28 = vadd.f32 1.0, %v903_v25 }
 0x131   : > { %916 = vrcp.f32 %v595_v26  ;;  %v596_v29 = vadd.f32 1.0, %v905_v27 }
 0x132   : > { %918 = vrcp.f32 %v592_v28 }
 0x133   : > { %920 = vrcp.f32 %v596_v29 }
 0x136   : > { %v907_v30 = vpop.eup %906 }
 0x137   : > { %v909_v31 = vpop.eup %908  ;;  %v613_v32 = vmul.f32 %v907_v30, %v1088_v48 }
 0x138   : > { %v911_v33 = vpop.eup %910  ;;  %v617_v34 = vmul.f32 %v909_v31, %v1090_v49 }
 0x139   : > { %v913_v35 = vpop.eup %912  ;;  %621 = vst [vmem:[%s1116_s27] sm:$0xff] %v613_v32  ;;  %v614_v36 = vmul.f32 %v911_v33, %v1092_v52 }
 0x13a   : > { %v915_v37 = vpop.eup %914  ;;  %625 = vst [vmem:[%s1116_s27 + $0x20] sm:$0xff] %v617_v34  ;;  %v618_v38 = vmul.f32 %v913_v35, %v1094_v53  ;;  %635 = sbr.rel (!%p1018_p6) target bundleno = 329 (0x149), region = 82 }
 0x13b   : > { %v917_v39 = vpop.eup %916  ;;  %622 = vst [vmem:[%s1116_s27 + $0x8] sm:$0xff] %v614_v36  ;;  %v615_v40 = vmul.f32 %v915_v37, %v1098_v58 }
 0x13c   : > { %v919_v41 = vpop.eup %918  ;;  %626 = vst [vmem:[%s1116_s27 + $0x28] sm:$0xff] %v618_v38  ;;  %v619_v42 = vmul.f32 %v917_v39, %v1100_v59 }
 0x13d   : > { %v921_v43 = vpop.eup %920  ;;  %623 = vst [vmem:[%s1116_s27 + $0x10] sm:$0xff] %v615_v40  ;;  %v616_v44 = vmul.f32 %v919_v41, %v1104_v0 }
 0x13e   : > { %627 = vst [vmem:[%s1116_s27 + $0x30] sm:$0xff] %v619_v42  ;;  %v620_v45 = vmul.f32 %v921_v43, %v1106_v1 }
 0x13f   : > { %624 = vst [vmem:[%s1116_s27 + $0x18] sm:$0xff] %v616_v44 }
 0x140   : > { %628 = vst [vmem:[%s1116_s27 + $0x38] sm:$0xff] %v620_v45  ;;  %v654_v46 = vld [vmem:[%s1116_s27] sm:$0xff] (%p1018_p6) }
 0x141   : > { %v662_v50 = vld [vmem:[%s1116_s27 + $0x20] sm:$0xff]  ;;  %655 = vst [vmem:[%s641_s30] sm:$0xff] %v654_v46 }
 0x142   : > { %v656_v47 = vld [vmem:[%s1116_s27 + $0x8] sm:$0xff]  ;;  %663 = vst [vmem:[%s641_s30 + $0x40] sm:$0xff] %v662_v50 }
 0x143   : > { %v664_v51 = vld [vmem:[%s1116_s27 + $0x28] sm:$0xff]  ;;  %657 = vst [vmem:[%s641_s30 + $0x8] sm:$0xff] %v656_v47 }
 0x144   : > { %v658_v48 = vld [vmem:[%s1116_s27 + $0x10] sm:$0xff]  ;;  %665 = vst [vmem:[%s641_s30 + $0x48] sm:$0xff] %v664_v51 }
 0x145   : > { %659 = vst [vmem:[%s641_s30 + $0x20] sm:$0xff] %v658_v48  ;;  %v666_v52 = vld [vmem:[%s1116_s27 + $0x30] sm:$0xff] }
 0x146   : > { %v660_v49 = vld [vmem:[%s1116_s27 + $0x18] sm:$0xff]  ;;  %667 = vst [vmem:[%s641_s30 + $0x60] sm:$0xff] %v666_v52 }
 0x147   : > { %661 = vst [vmem:[%s641_s30 + $0x28] sm:$0xff] %v660_v49  ;;  %v668_v53 = vld [vmem:[%s1116_s27 + $0x38] sm:$0xff] }
 0x148   : > { %669 = vst [vmem:[%s641_s30 + $0x68] sm:$0xff] %v668_v53 }
 0x149 PF: > { %s13_s16 = sadd.s32 1, %s960_s16   ;;  %s1166_s12 = smov %s948_s13 }
 0x14a   : > { %p10_p12 = scmp.ge.s32.totalorder %s13_s16, 4   ;;  %s1167_s13 = smov %s1023_s22 }
 0x14b   : > { %s1168_s14 = smov %s956_s15  ;;  %s1169_s15 = smov %s1171_s17 }
 0x14c   :  { %12 = sbr.rel (!%p10_p12) target bundleno = 3 (0x3), region = 142 }

// kernel: block_forward.13
= control target key start
LH: loop header
LB: loop body
LE: loop exit
PB: predicated region body
PF: predicated region fallthrough
CT: control target
= control target key end

     0   :  { %s739_s1 = inlined_call_operand.vmem [shape: bf16[512,128], index: 1, kind: input, shape index: {}]   ;;  %s740_s0 = inlined_call_operand.vmem [shape: f32[32,512], index: 0, kind: input, shape index: {}]   ;;  %s741_s2 = inlined_call_operand.vmem [shape: f32[1,128], index: 2, kind: input, shape index: {}]   ;;  %s742_s3 = inlined_call_operand.vmem [shape: f32[32,128], index: 3, kind: output, shape index: {}]  }
   0x1   :  { %v528_v0 = vld [vmem:[%s739_s1 + $0x40] sm:$0xff]   ;;  %v532_v4 = vld [vmem:[%s739_s1 + $0x48] sm:$0xff]   ;;  %v536_v8 = vld [vmem:[%s739_s1 + $0x50] sm:$0xff]  }
   0x2   :  { %v529_v1 = vld [vmem:[%s739_s1 + $0xc0] sm:$0xff]   ;;  %472 = vmatprep.subr.bf16.mxu0 %v528_v0  ;;  %v533_v5 = vld [vmem:[%s739_s1 + $0xc8] sm:$0xff]   ;;  %v537_v9 = vld [vmem:[%s739_s1 + $0xd0] sm:$0xff]  }
   0x3   :  { %v530_v2 = vld [vmem:[%s739_s1] sm:$0xff]   ;;  %500 = vmatprep.subr.bf16.mxu1 %v529_v1  ;;  %v534_v6 = vld [vmem:[%s739_s1 + $0x8] sm:$0xff]   ;;  %v538_v10 = vld [vmem:[%s739_s1 + $0x10] sm:$0xff]  }
   0x4   :  { %v531_v3 = vld [vmem:[%s739_s1 + $0x80] sm:$0xff]   ;;  %473 = vmatpush3.bf16.msra.mxu0 %v530_v2  ;;  %v535_v7 = vld [vmem:[%s739_s1 + $0x88] sm:$0xff]   ;;  %v539_v11 = vld [vmem:[%s739_s1 + $0x90] sm:$0xff]  }
   0x5   :  { %501 = vmatpush3.bf16.msra.mxu1 %v531_v3  ;;  %474 = vmatprep.subr.bf16.mxu0 %v532_v4  ;;  %v540_v12 = vld [vmem:[%s739_s1 + $0x58] sm:$0xff]   ;;  %v544_v16 = vld [vmem:[%s739_s1 + $0x60] sm:$0xff]   ;;  %v548_v20 = vld [vmem:[%s739_s1 + $0x68] sm:$0xff]  }
   0x6   :  { %502 = vmatprep.subr.bf16.mxu1 %v533_v5  ;;  %v541_v13 = vld [vmem:[%s739_s1 + $0xd8] sm:$0xff]   ;;  %v545_v17 = vld [vmem:[%s739_s1 + $0xe0] sm:$0xff]   ;;  %v549_v21 = vld [vmem:[%s739_s1 + $0xe8] sm:$0xff]  }
   0x7   :  { %v542_v14 = vld [vmem:[%s739_s1 + $0x18] sm:$0xff]   ;;  %v546_v18 = vld [vmem:[%s739_s1 + $0x20] sm:$0xff]   ;;  %v550_v22 = vld [vmem:[%s739_s1 + $0x28] sm:$0xff]  }
   0x8   :  { %475 = vmatpush3.bf16.msra.mxu0 %v534_v6  ;;  %v543_v15 = vld [vmem:[%s739_s1 + $0x98] sm:$0xff]   ;;  %v547_v19 = vld [vmem:[%s739_s1 + $0xa0] sm:$0xff]   ;;  %v551_v23 = vld [vmem:[%s739_s1 + $0xa8] sm:$0xff]  }
   0x9   :  { %503 = vmatpush3.bf16.msra.mxu1 %v535_v7  ;;  %476 = vmatprep.subr.bf16.mxu0 %v536_v8  ;;  %v552_v24 = vld [vmem:[%s739_s1 + $0x70] sm:$0xff]   ;;  %v556_v28 = vld [vmem:[%s739_s1 + $0x78] sm:$0xff]   ;;  %v28_v32 = vld [vmem:[%s740_s0 + $0x8] sm:$0xff] }
   0xa   :  { %504 = vmatprep.subr.bf16.mxu1 %v537_v9  ;;  %v553_v25 = vld [vmem:[%s739_s1 + $0xf0] sm:$0xff]   ;;  %v557_v29 = vld [vmem:[%s739_s1 + $0xf8] sm:$0xff]   ;;  %v32_v33 = vld [vmem:[%s740_s0 + $0x28] sm:$0xff] }
   0xb   :  { %v554_v26 = vld [vmem:[%s739_s1 + $0x30] sm:$0xff]   ;;  %v558_v30 = vld [vmem:[%s739_s1 + $0x38] sm:$0xff]   ;;  %v44_v35 = vpack.c.bf16 %v32_v33, %v28_v32  ;;  %v27_v37 = vld [vmem:[%s740_s0] sm:$0xff] }
   0xc   :  { %477 = vmatpush3.bf16.msra.mxu0 %v538_v10  ;;  %v555_v27 = vld [vmem:[%s739_s1 + $0xb0] sm:$0xff]   ;;  %v559_v31 = vld [vmem:[%s739_s1 + $0xb8] sm:$0xff]   ;;  %v31_v38 = vld [vmem:[%s740_s0 + $0x20] sm:$0xff] }
   0xd   :  { %505 = vmatpush3.bf16.msra.mxu1 %v539_v11  ;;  %478 = vmatprep.subr.bf16.mxu0 %v540_v12  ;;  %v30_v34 = vld [vmem:[%s740_s0 + $0x18] sm:$0xff]  ;;  %v43_v40 = vpack.c.bf16 %v31_v38, %v27_v37  ;;  %v29_v41 = vld [vmem:[%s740_s0 + $0x10] sm:$0xff]  ;;  %v36_v43 = vld [vmem:[%s740_s0 + $0x48] sm:$0xff] }
   0xe   :  { %506 = vmatprep.subr.bf16.mxu1 %v541_v13  ;;  %v34_v36 = vld [vmem:[%s740_s0 + $0x38] sm:$0xff]  ;;  %v33_v42 = vld [vmem:[%s740_s0 + $0x30] sm:$0xff]  ;;  %339 = vmatprep.mubr.bf16.mxu0 %v44_v35  ;;  %v40_v45 = vld [vmem:[%s740_s0 + $0x68] sm:$0xff] }
   0xf   :  { %v46_v39 = vpack.c.bf16 %v34_v36, %v30_v34  ;;  %v45_v44 = vpack.c.bf16 %v33_v42, %v29_v41  ;;  %v38_v46 = vld [vmem:[%s740_s0 + $0x58] sm:$0xff]  ;;  %v48_v48 = vpack.c.bf16 %v40_v45, %v36_v43  ;;  %v35_v50 = vld [vmem:[%s740_s0 + $0x40] sm:$0xff]  ;;  %v37_v52 = vld [vmem:[%s740_s0 + $0x50] sm:$0xff] }
  0x10   :  { %479 = vmatpush3.bf16.msra.mxu0 %v542_v14  ;;  %v42_v47 = vld [vmem:[%s740_s0 + $0x78] sm:$0xff]  ;;  %v39_v51 = vld [vmem:[%s740_s0 + $0x60] sm:$0xff]  ;;  %v41_v53 = vld [vmem:[%s740_s0 + $0x70] sm:$0xff] }
  0x11   :  { %507 = vmatpush3.bf16.msra.mxu1 %v543_v15  ;;  %480 = vmatprep.subr.bf16.mxu0 %v544_v16  ;;  %v50_v49 = vpack.c.bf16 %v42_v47, %v38_v46  ;;  %v47_v54 = vpack.c.bf16 %v39_v51, %v35_v50  ;;  %v49_v55 = vpack.c.bf16 %v41_v53, %v37_v52  ;;  %v471_v1 = vld [vmem:[%s741_s2] ss:$0 sm:$0xff] }
  0x12   :  { %508 = vmatprep.subr.bf16.mxu1 %v545_v17  ;;  %388 = vmatprep.mubr.bf16.mxu1 %v46_v39 }
  0x14   :  { %481 = vmatpush3.bf16.msra.mxu0 %v546_v18 }
  0x15   :  { %509 = vmatpush3.bf16.msra.mxu1 %v547_v19  ;;  %482 = vmatprep.subr.bf16.mxu0 %v548_v20 }
  0x16   :  { %510 = vmatprep.subr.bf16.mxu1 %v549_v21 }
  0x18   :  { %483 = vmatpush3.bf16.msra.mxu0 %v550_v22 }
  0x19   :  { %511 = vmatpush3.bf16.msra.mxu1 %v551_v23  ;;  %484 = vmatprep.subr.bf16.mxu0 %v552_v24 }
  0x1a   :  { %512 = vmatprep.subr.bf16.mxu1 %v553_v25 }
  0x1c   :  { %485 = vmatpush3.bf16.msra.mxu0 %v554_v26 }
  0x1d   :  { %513 = vmatpush3.bf16.msra.mxu1 %v555_v27  ;;  %486 = vmatprep.subr.bf16.mxu0 %v556_v28 }
  0x1e   :  { %514 = vmatprep.subr.bf16.mxu1 %v557_v29 }
  0x20   :  { %487 = vmatpush3.bf16.msra.mxu0 %v558_v30 }
  0x21   :  { %515 = vmatpush3.bf16.msra.mxu1 %v559_v31 }
  0x23   :  { %340 = vmatmul.mubr.bf16.vlgmr.msra.gmra.mrb[0].mxu0 %v43_v40 }
  0x24   :  { %389 = vmatmul.mubr.bf16.vlgmr.msra.gmra.mrb[0].mxu1 %v45_v44  ;;  %347 = vmatprep.mubr.bf16.mxu0 %v48_v48 }
  0x25   :  { %396 = vmatprep.mubr.bf16.mxu1 %v50_v49 }
  0x2b   :  { %348 = vmatmul.mubr.bf16.gmra.mrb[4].mxu0 %v47_v54 }
  0x2c   :  { %397 = vmatmul.mubr.bf16.gmra.mrb[4].mxu1 %v49_v55 }
  0xf6   :  { %v488_v56 = vpop.f32.mrb[0].mxu0 }
  0xf7   :  { %v516_v57 = vpop.f32.mrb[0].mxu1  ;;  %v489_v58 = vpop.f32.mrb[1].mxu0 }
  0xf8   :  { %v490_v59 = vadd.f32 %v489_v58, %v488_v56  ;;  %v517_v60 = vpop.f32.mrb[1].mxu1  ;;  %v491_v61 = vpop.f32.mrb[2].mxu0 }
  0xf9   :  { %v518_v62 = vadd.f32 %v517_v60, %v516_v57  ;;  %v519_v63 = vpop.f32.mrb[2].mxu1  ;;  %v492_v0 = vpop.f32.mrb[3].mxu0 }
  0xfa   :  { %v493_v2 = vadd.f32 %v492_v0, %v491_v61  ;;  %v520_v3 = vpop.f32.mrb[3].mxu1 }
  0xfb   :  { %v391_v4 = vadd.f32 %v518_v62, %v490_v59  ;;  %v521_v5 = vadd.f32 %v520_v3, %v519_v63 }
  0xfd   :  { %v427_v6 = vadd.f32 %v471_v1, %v391_v4  ;;  %v394_v7 = vadd.f32 %v521_v5, %v493_v2 }
  0xfe   :  { %v494_v8 = vpop.f32.mrb[4].mxu0 }
  0xff   :  { %431 = vst [vmem:[%s742_s3] sm:$0xff] %v427_v6  ;;  %v428_v9 = vadd.f32 %v471_v1, %v394_v7  ;;  %v522_v10 = vpop.f32.mrb[4].mxu1  ;;  %v495_v11 = vpop.f32.mrb[5].mxu0 }
 0x100   :  { %v496_v12 = vadd.f32 %v495_v11, %v494_v8  ;;  %v523_v13 = vpop.f32.mrb[5].mxu1  ;;  %v497_v14 = vpop.f32.mrb[6].mxu0 }
 0x101   :  { %432 = vst [vmem:[%s742_s3 + $0x8] sm:$0xff] %v428_v9  ;;  %v524_v15 = vadd.f32 %v523_v13, %v522_v10  ;;  %v525_v16 = vpop.f32.mrb[6].mxu1  ;;  %v498_v17 = vpop.f32.mrb[7].mxu0 }
 0x102   :  { %v499_v18 = vadd.f32 %v498_v17, %v497_v14  ;;  %v526_v19 = vpop.f32.mrb[7].mxu1 }
 0x103   :  { %v399_v20 = vadd.f32 %v524_v15, %v496_v12  ;;  %v527_v21 = vadd.f32 %v526_v19, %v525_v16 }
 0x105   :  { %v429_v22 = vadd.f32 %v471_v1, %v399_v20  ;;  %v402_v23 = vadd.f32 %v527_v21, %v499_v18 }
 0x107   :  { %433 = vst [vmem:[%s742_s3 + $0x10] sm:$0xff] %v429_v22  ;;  %v430_v24 = vadd.f32 %v471_v1, %v402_v23 }
 0x109   :  { %434 = vst [vmem:[%s742_s3 + $0x18] sm:$0xff] %v430_v24 }

</bundles_post_ra>
